<compile_context>
chip_gen: v6e
topology: v6e:2x2x1
jax: 0.10.0
libtpu: 0.0.40
codegen_flags: <defaults>
</compile_context>

<pallas_src>
import functools

import jax
import jax.numpy as jnp
from jax.experimental import pallas as pl
from jax.experimental.pallas import tpu as pltpu


LANE = 128  # pad all channel/score dimensions to one full TPU lane width


# ----------------------------------------------------------------------------
# Fused kernel: entire forward pass, one invocation, everything in VMEM.
# ----------------------------------------------------------------------------
def _fused_tcn_kernel(*refs, kernel_size, dilations, has_downsample, pad_max,
                      c_head, n_out_real, lb, ub, n_select):
    refs = list(refs)
    pad_ref = refs.pop()        # VMEM scratch: [B, pad_max + T, LANE]
    o_ref = refs.pop()          # output ref
    it = iter(refs)

    h = next(it)[...].astype(jnp.float32)            # x_pad: [B, T, LANE]
    b_sz, t_len, lane = h.shape
    k = kernel_size

    # Zero the left padding region of the shared time buffer exactly once;
    # it is never overwritten by any layer.
    if pad_max > 0:
        pad_ref[:, :pad_max, :] = jnp.zeros((b_sz, pad_max, lane), jnp.float32)

    def causal_conv(inp, w_flat, bias, d):
        """Conv1d(padding=(k-1)*d) + Chomp1d as one im2col matmul.

        out[t] = bias + sum_j inp[t - (k-1-j)*d] @ w[j]   (zeros for t < 0)
        """
        # Store layer input at a sublane-aligned offset inside the scratch.
        pad_ref[:, pad_max:, :] = inp
        taps = [
            pad_ref[:, pad_max - (k - 1 - j) * d:
                       pad_max - (k - 1 - j) * d + t_len, :]
            for j in range(k)
        ]
        col = jnp.concatenate(taps, axis=-1).reshape(b_sz * t_len, k * lane)
        out = jnp.dot(col, w_flat, preferred_element_type=jnp.float32) + bias
        return out.reshape(b_sz, t_len, lane)

    # ----- TemporalConvNet ---------------------------------------------------
    for blk, d in enumerate(dilations):
        w1 = next(it)[...]; b1 = next(it)[...]
        w2 = next(it)[...]; b2 = next(it)[...]
        h1 = jnp.maximum(causal_conv(h, w1, b1, d), 0.0)     # relu1 (dropout1 = id)
        h2 = jnp.maximum(causal_conv(h1, w2, b2, d), 0.0)    # relu2 (dropout2 = id)
        if has_downsample[blk]:
            wd = next(it)[...]; bd = next(it)[...]
            res = (jnp.dot(h.reshape(b_sz * t_len, lane), wd,
                           preferred_element_type=jnp.float32) + bd
                   ).reshape(b_sz, t_len, lane)
        else:
            res = h
        h = jnp.maximum(h2 + res, 0.0)                        # block relu

    # ----- score head: maxpool(time) -> Linear -> LayerNorm -> SiLU -> Linear
    feats = jnp.max(h, axis=1)                                # [B, LANE]
    hw1 = next(it)[...]; hb1 = next(it)[...]
    gam = next(it)[...]; bet = next(it)[...]
    hw2 = next(it)[...]; hb2 = next(it)[...]

    z = jnp.dot(feats, hw1, preferred_element_type=jnp.float32) + hb1
    ch = jax.lax.broadcasted_iota(jnp.int32, z.shape, 1)
    ch_mask = (ch < c_head).astype(jnp.float32)               # real-channel mask
    inv_c = jnp.float32(1.0 / c_head)
    mean = jnp.sum(z * ch_mask, axis=-1, keepdims=True) * inv_c
    centered = (z - mean) * ch_mask
    var = jnp.sum(centered * centered, axis=-1, keepdims=True) * inv_c
    hn = centered * jax.lax.rsqrt(var + 1e-5) * gam + bet
    s_act = hn * jax.nn.sigmoid(hn)                           # SiLU (dropout = id)
    scores = jnp.dot(s_act, hw2, preferred_element_type=jnp.float32) + hb2  # [B, LANE]

    # ----- top-k selection (matches torch: scores * mask, then softmax) ------
    out_lane = jax.lax.broadcasted_iota(jnp.int32, scores.shape, 1)
    out_mask = out_lane < n_out_real
    neg_big = jnp.float32(-1e30)
    s_m = jnp.where(out_mask, scores, neg_big)

    if n_select < n_out_real:
        # TODO(synk): torch.topk tie-breaking (first occurrence) is not
        # reproduced exactly when scores contain repeated values.
        def _drop_max(_, work):
            cur = jnp.max(work, axis=-1, keepdims=True)
            return jnp.where(work >= cur, neg_big, work)
        work = jax.lax.fori_loop(0, n_select - 1, _drop_max, s_m)
        kth = jnp.max(work, axis=-1, keepdims=True)
        keep = (s_m >= kth).astype(jnp.float32)
        scores = scores * keep
        s_m = jnp.where(out_mask, scores, neg_big)

    # ----- softmax -> clamp(lb, ub) -> renormalize ---------------------------
    m = jnp.max(s_m, axis=-1, keepdims=True)
    e = jnp.where(out_mask, jnp.exp(s_m - m), 0.0)
    w = e * pl.reciprocal(jnp.sum(e, axis=-1, keepdims=True), approx=True)
    w = jnp.where(out_mask, jnp.clip(w, lb, ub), 0.0)
    w = w * pl.reciprocal(jnp.sum(w, axis=-1, keepdims=True) + 1e-8, approx=True)
    o_ref[...] = w.astype(o_ref.dtype)


# ----------------------------------------------------------------------------
# Parameter packing: lane-pad to 128 and flatten conv weights for im2col.
# ----------------------------------------------------------------------------
def _pad_to(a, shape):
    return jnp.pad(a, [(0, s - d) for d, s in zip(a.shape, shape)])


def pack_params(params, kernel_size):
    packed, has_ds = [], []
    for blk in params["blocks"]:
        k = kernel_size
        packed += [
            _pad_to(blk["w1"], (k, LANE, LANE)).reshape(k * LANE, LANE),
            _pad_to(blk["b1"], (1, LANE)),
            _pad_to(blk["w2"], (k, LANE, LANE)).reshape(k * LANE, LANE),
            _pad_to(blk["b2"], (1, LANE)),
        ]
        if "wd" in blk:
            packed += [_pad_to(blk["wd"], (LANE, LANE)),
                       _pad_to(blk["bd"], (1, LANE))]
            has_ds.append(True)
        else:
            has_ds.append(False)
    head = params["head"]
    packed += [
        _pad_to(head["w1"], (LANE, LANE)), _pad_to(head["b1"], (1, LANE)),
        _pad_to(head["gamma"], (1, LANE)), _pad_to(head["beta"], (1, LANE)),
        _pad_to(head["w2"], (LANE, LANE)), _pad_to(head["b2"], (1, LANE)),
    ]
    return packed, tuple(has_ds)


# ----------------------------------------------------------------------------
# Forward wrapper: one fused pallas_call, whole batch in a single grid step.
# ----------------------------------------------------------------------------
def portfolio_tcn_forward(x, params, *, kernel_size, lb, ub, n_select, n_stocks):
    b_sz, t_len, n_feat = x.shape
    c_head = params["head"]["w1"].shape[0]
    n_sel = n_select if n_select is not None else n_stocks
    dilations = tuple(2 ** i for i in range(len(params["blocks"])))

    # Left-pad size of the shared causal-conv time buffer, rounded up to a
    # multiple of 8 sublanes so the data-region store is always aligned.
    raw_pad = (kernel_size - 1) * max(dilations)
    pad_max = ((raw_pad + 7) // 8) * 8 if raw_pad > 0 else 0

    packed, has_ds = pack_params(params, kernel_size)
    x_pad = _pad_to(x.astype(jnp.float32), (b_sz, t_len, LANE))

    kernel = functools.partial(
        _fused_tcn_kernel,
        kernel_size=kernel_size, dilations=dilations, has_downsample=has_ds,
        pad_max=pad_max, c_head=c_head, n_out_real=n_stocks,
        lb=float(lb), ub=float(ub), n_select=n_sel)

    vmem = pl.BlockSpec(memory_space=pltpu.MemorySpace.VMEM)
    out = pl.pallas_call(
        kernel,
        in_specs=[vmem] * (1 + len(packed)),
        out_specs=vmem,
        out_shape=jax.ShapeDtypeStruct((b_sz, LANE), jnp.float32),
        scratch_shapes=[pltpu.VMEM((b_sz, pad_max + t_len, LANE), jnp.float32)],
    )(x_pad, *packed)
    return out[:, :n_stocks]


# ----------------------------------------------------------------------------
# Parameter construction (deterministic, synthetic; real i.e. unpadded shapes).
# ----------------------------------------------------------------------------
def init_params(key, n_feature, n_output, num_channels, kernel_size):
    params = {"blocks": []}
    c_in = n_feature
    for c_out in num_channels:
        key, *ks = jax.random.split(key, 8)
        blk = {
            "w1": 0.01 * jax.random.normal(ks[0], (kernel_size, c_in, c_out), jnp.float32),
            "b1": 0.01 * jax.random.normal(ks[1], (1, c_out), jnp.float32),
            "w2": 0.01 * jax.random.normal(ks[2], (kernel_size, c_out, c_out), jnp.float32),
            "b2": 0.01 * jax.random.normal(ks[3], (1, c_out), jnp.float32),
        }
        if c_in != c_out:  # 1x1 downsample conv
            blk["wd"] = 0.01 * jax.random.normal(ks[4], (c_in, c_out), jnp.float32)
            blk["bd"] = 0.01 * jax.random.normal(ks[5], (1, c_out), jnp.float32)
        params["blocks"].append(blk)
        c_in = c_out

    c = num_channels[-1]
    key, k1, k2 = jax.random.split(key, 3)
    params["head"] = {
        "w1": 0.1 * jax.random.normal(k1, (c, c), jnp.float32),
        "b1": jnp.zeros((1, c), jnp.float32),
        "gamma": jnp.ones((1, c), jnp.float32),
        "beta": jnp.zeros((1, c), jnp.float32),
        "w2": 0.1 * jax.random.normal(k2, (c, n_output), jnp.float32),
        "b2": jnp.zeros((1, n_output), jnp.float32),
    }
    return params


if __name__ == "__main__":
    # Small deterministic configuration consistent with the module.
    batch = 2
    n_timestep = 16          # seq_len
    n_stocks = 8             # n_feature == n_output
    num_channels = [16, 16]
    kernel_size = 3
    lb, ub = 0.0, 0.1
    n_select = None          # None -> n_stocks (top-k branch not taken)

    key = jax.random.PRNGKey(0)
    k_param, k_x = jax.random.split(key)
    params = init_params(k_param, n_stocks, n_stocks, num_channels, kernel_size)
    x = jax.random.normal(k_x, (batch, n_timestep, n_stocks), jnp.float32)

    fwd = jax.jit(functools.partial(
        portfolio_tcn_forward, kernel_size=kernel_size, lb=lb, ub=ub,
        n_select=n_select, n_stocks=n_stocks))
    weights = jax.block_until_ready(fwd(x, params))

    assert weights.shape == (batch, n_stocks)
    assert bool(jnp.all(jnp.isfinite(weights)))
    assert bool(jnp.all(weights >= 0.0))
    assert bool(jnp.all(jnp.abs(jnp.sum(weights, axis=-1) - 1.0) < 2e-2))
    print("KERNEL_OK")
</pallas_src>

<mosaic_0001>
module attributes {stable_mosaic.version = 11 : i64} {
  func.func @_fused_tcn_kernel(%arg0: memref<2x16x128xf32, #tpu.memory_space<vmem>>, %arg1: memref<384x128xf32, #tpu.memory_space<vmem>>, %arg2: memref<1x128xf32, #tpu.memory_space<vmem>>, %arg3: memref<384x128xf32, #tpu.memory_space<vmem>>, %arg4: memref<1x128xf32, #tpu.memory_space<vmem>>, %arg5: memref<128x128xf32, #tpu.memory_space<vmem>>, %arg6: memref<1x128xf32, #tpu.memory_space<vmem>>, %arg7: memref<384x128xf32, #tpu.memory_space<vmem>>, %arg8: memref<1x128xf32, #tpu.memory_space<vmem>>, %arg9: memref<384x128xf32, #tpu.memory_space<vmem>>, %arg10: memref<1x128xf32, #tpu.memory_space<vmem>>, %arg11: memref<128x128xf32, #tpu.memory_space<vmem>>, %arg12: memref<1x128xf32, #tpu.memory_space<vmem>>, %arg13: memref<1x128xf32, #tpu.memory_space<vmem>>, %arg14: memref<1x128xf32, #tpu.memory_space<vmem>>, %arg15: memref<128x128xf32, #tpu.memory_space<vmem>>, %arg16: memref<1x128xf32, #tpu.memory_space<vmem>>, %arg17: memref<2x128xf32, #tpu.memory_space<vmem>>, %arg18: memref<2x24x128xf32, #tpu.memory_space<vmem>>) attributes {dimension_semantics = [], scalar_prefetch = 0 : i64, scratch_operands = 1 : i64, tpu.core_type = #tpu.core_type<tc>} {
    %c0 = arith.constant 0 : index
    %c0_0 = arith.constant 0 : index
    %c0_1 = arith.constant 0 : index
    %0 = vector.load %arg0[%c0, %c0_0, %c0_1] : memref<2x16x128xf32, #tpu.memory_space<vmem>>, vector<2x16x128xf32>
    %cst = arith.constant 0.000000e+00 : f32
    %1 = vector.broadcast %cst : f32 to vector<2x8x128xf32>
    %c0_2 = arith.constant 0 : index
    %c0_3 = arith.constant 0 : index
    %c0_4 = arith.constant 0 : index
    %2 = vector.load %arg18[%c0_2, %c0_3, %c0_4] : memref<2x24x128xf32, #tpu.memory_space<vmem>>, vector<2x8x128xf32>
    tpu.vector_store %arg18[%c0_2, %c0_3, %c0_4], %1 {strides = array<i32>} : memref<2x24x128xf32, #tpu.memory_space<vmem>>, vector<2x8x128xf32>,
    %c0_5 = arith.constant 0 : index
    %c0_6 = arith.constant 0 : index
    %3 = vector.load %arg1[%c0_5, %c0_6] : memref<384x128xf32, #tpu.memory_space<vmem>>, vector<384x128xf32>
    %c0_7 = arith.constant 0 : index
    %c0_8 = arith.constant 0 : index
    %4 = vector.load %arg2[%c0_7, %c0_8] : memref<1x128xf32, #tpu.memory_space<vmem>>, vector<1x128xf32>
    %c0_9 = arith.constant 0 : index
    %c0_10 = arith.constant 0 : index
    %5 = vector.load %arg3[%c0_9, %c0_10] : memref<384x128xf32, #tpu.memory_space<vmem>>, vector<384x128xf32>
    %c0_11 = arith.constant 0 : index
    %c0_12 = arith.constant 0 : index
    %6 = vector.load %arg4[%c0_11, %c0_12] : memref<1x128xf32, #tpu.memory_space<vmem>>, vector<1x128xf32>
    %c0_13 = arith.constant 0 : index
    %c8 = arith.constant 8 : index
    %c0_14 = arith.constant 0 : index
    %7 = vector.load %arg18[%c0_13, %c8, %c0_14] : memref<2x24x128xf32, #tpu.memory_space<vmem>>, vector<2x16x128xf32>
    tpu.vector_store %arg18[%c0_13, %c8, %c0_14], %0 {strides = array<i32>} : memref<2x24x128xf32, #tpu.memory_space<vmem>>, vector<2x16x128xf32>,
    %c0_15 = arith.constant 0 : index
    %c6 = arith.constant 6 : index
    %c0_16 = arith.constant 0 : index
    %8 = vector.load %arg18[%c0_15, %c6, %c0_16] : memref<2x24x128xf32, #tpu.memory_space<vmem>>, vector<2x16x128xf32>
    %c0_17 = arith.constant 0 : index
    %c7 = arith.constant 7 : index
    %c0_18 = arith.constant 0 : index
    %9 = vector.load %arg18[%c0_17, %c7, %c0_18] : memref<2x24x128xf32, #tpu.memory_space<vmem>>, vector<2x16x128xf32>
    %c0_19 = arith.constant 0 : index
    %c8_20 = arith.constant 8 : index
    %c0_21 = arith.constant 0 : index
    %10 = vector.load %arg18[%c0_19, %c8_20, %c0_21] : memref<2x24x128xf32, #tpu.memory_space<vmem>>, vector<2x16x128xf32>
    %11 = tpu.concatenate %8, %9, %10 in 2 : vector<2x16x128xf32>, vector<2x16x128xf32>, vector<2x16x128xf32> -> vector<2x16x384xf32>
    %12 = vector.shape_cast %11 : vector<2x16x384xf32> to vector<32x384xf32>
    %cst_22 = arith.constant dense<0.000000e+00> : vector<32x128xf32>
    %13 = tpu.matmul %12, %3, %cst_22 {dimension_numbers = #tpu.dot_dimension_numbers<[1], [0], [0], [1], [0, 0, 1, 1], [], []>} : vector<32x384xf32>, vector<384x128xf32>, vector<32x128xf32> -> vector<32x128xf32>
    %14 = vector.broadcast %4 : vector<1x128xf32> to vector<32x128xf32>
    %15 = arith.addf %13, %14 : vector<32x128xf32>
    %16 = vector.shape_cast %15 : vector<32x128xf32> to vector<2x16x128xf32>
    %cst_23 = arith.constant 0.000000e+00 : f32
    %17 = vector.broadcast %cst_23 : f32 to vector<2x16x128xf32>
    %18 = arith.maximumf %16, %17 : vector<2x16x128xf32>
    %c0_24 = arith.constant 0 : index
    %c8_25 = arith.constant 8 : index
    %c0_26 = arith.constant 0 : index
    %19 = vector.load %arg18[%c0_24, %c8_25, %c0_26] : memref<2x24x128xf32, #tpu.memory_space<vmem>>, vector<2x16x128xf32>
    tpu.vector_store %arg18[%c0_24, %c8_25, %c0_26], %18 {strides = array<i32>} : memref<2x24x128xf32, #tpu.memory_space<vmem>>, vector<2x16x128xf32>,
    %c0_27 = arith.constant 0 : index
    %c6_28 = arith.constant 6 : index
    %c0_29 = arith.constant 0 : index
    %20 = vector.load %arg18[%c0_27, %c6_28, %c0_29] : memref<2x24x128xf32, #tpu.memory_space<vmem>>, vector<2x16x128xf32>
    %c0_30 = arith.constant 0 : index
    %c7_31 = arith.constant 7 : index
    %c0_32 = arith.constant 0 : index
    %21 = vector.load %arg18[%c0_30, %c7_31, %c0_32] : memref<2x24x128xf32, #tpu.memory_space<vmem>>, vector<2x16x128xf32>
    %c0_33 = arith.constant 0 : index
    %c8_34 = arith.constant 8 : index
    %c0_35 = arith.constant 0 : index
    %22 = vector.load %arg18[%c0_33, %c8_34, %c0_35] : memref<2x24x128xf32, #tpu.memory_space<vmem>>, vector<2x16x128xf32>
    %23 = tpu.concatenate %20, %21, %22 in 2 : vector<2x16x128xf32>, vector<2x16x128xf32>, vector<2x16x128xf32> -> vector<2x16x384xf32>
    %24 = vector.shape_cast %23 : vector<2x16x384xf32> to vector<32x384xf32>
    %cst_36 = arith.constant dense<0.000000e+00> : vector<32x128xf32>
    %25 = tpu.matmul %24, %5, %cst_36 {dimension_numbers = #tpu.dot_dimension_numbers<[1], [0], [0], [1], [0, 0, 1, 1], [], []>} : vector<32x384xf32>, vector<384x128xf32>, vector<32x128xf32> -> vector<32x128xf32>
    %26 = vector.broadcast %6 : vector<1x128xf32> to vector<32x128xf32>
    %27 = arith.addf %25, %26 : vector<32x128xf32>
    %28 = vector.shape_cast %27 : vector<32x128xf32> to vector<2x16x128xf32>
    %cst_37 = arith.constant 0.000000e+00 : f32
    %29 = vector.broadcast %cst_37 : f32 to vector<2x16x128xf32>
    %30 = arith.maximumf %28, %29 : vector<2x16x128xf32>
    %c0_38 = arith.constant 0 : index
    %c0_39 = arith.constant 0 : index
    %31 = vector.load %arg5[%c0_38, %c0_39] : memref<128x128xf32, #tpu.memory_space<vmem>>, vector<128x128xf32>
    %c0_40 = arith.constant 0 : index
    %c0_41 = arith.constant 0 : index
    %32 = vector.load %arg6[%c0_40, %c0_41] : memref<1x128xf32, #tpu.memory_space<vmem>>, vector<1x128xf32>
    %33 = vector.shape_cast %0 : vector<2x16x128xf32> to vector<32x128xf32>
    %cst_42 = arith.constant dense<0.000000e+00> : vector<32x128xf32>
    %34 = tpu.matmul %33, %31, %cst_42 {dimension_numbers = #tpu.dot_dimension_numbers<[1], [0], [0], [1], [0, 0, 1, 1], [], []>} : vector<32x128xf32>, vector<128x128xf32>, vector<32x128xf32> -> vector<32x128xf32>
    %35 = vector.broadcast %32 : vector<1x128xf32> to vector<32x128xf32>
    %36 = arith.addf %34, %35 : vector<32x128xf32>
    %37 = vector.shape_cast %36 : vector<32x128xf32> to vector<2x16x128xf32>
    %38 = arith.addf %30, %37 : vector<2x16x128xf32>
    %cst_43 = arith.constant 0.000000e+00 : f32
    %39 = vector.broadcast %cst_43 : f32 to vector<2x16x128xf32>
    %40 = arith.maximumf %38, %39 : vector<2x16x128xf32>
    %c0_44 = arith.constant 0 : index
    %c0_45 = arith.constant 0 : index
    %41 = vector.load %arg7[%c0_44, %c0_45] : memref<384x128xf32, #tpu.memory_space<vmem>>, vector<384x128xf32>
    %c0_46 = arith.constant 0 : index
    %c0_47 = arith.constant 0 : index
    %42 = vector.load %arg8[%c0_46, %c0_47] : memref<1x128xf32, #tpu.memory_space<vmem>>, vector<1x128xf32>
    %c0_48 = arith.constant 0 : index
    %c0_49 = arith.constant 0 : index
    %43 = vector.load %arg9[%c0_48, %c0_49] : memref<384x128xf32, #tpu.memory_space<vmem>>, vector<384x128xf32>
    %c0_50 = arith.constant 0 : index
    %c0_51 = arith.constant 0 : index
    %44 = vector.load %arg10[%c0_50, %c0_51] : memref<1x128xf32, #tpu.memory_space<vmem>>, vector<1x128xf32>
    %c0_52 = arith.constant 0 : index
    %c8_53 = arith.constant 8 : index
    %c0_54 = arith.constant 0 : index
    %45 = vector.load %arg18[%c0_52, %c8_53, %c0_54] : memref<2x24x128xf32, #tpu.memory_space<vmem>>, vector<2x16x128xf32>
    tpu.vector_store %arg18[%c0_52, %c8_53, %c0_54], %40 {strides = array<i32>} : memref<2x24x128xf32, #tpu.memory_space<vmem>>, vector<2x16x128xf32>,
    %c0_55 = arith.constant 0 : index
    %c4 = arith.constant 4 : index
    %c0_56 = arith.constant 0 : index
    %46 = vector.load %arg18[%c0_55, %c4, %c0_56] : memref<2x24x128xf32, #tpu.memory_space<vmem>>, vector<2x16x128xf32>
    %c0_57 = arith.constant 0 : index
    %c6_58 = arith.constant 6 : index
    %c0_59 = arith.constant 0 : index
    %47 = vector.load %arg18[%c0_57, %c6_58, %c0_59] : memref<2x24x128xf32, #tpu.memory_space<vmem>>, vector<2x16x128xf32>
    %c0_60 = arith.constant 0 : index
    %c8_61 = arith.constant 8 : index
    %c0_62 = arith.constant 0 : index
    %48 = vector.load %arg18[%c0_60, %c8_61, %c0_62] : memref<2x24x128xf32, #tpu.memory_space<vmem>>, vector<2x16x128xf32>
    %49 = tpu.concatenate %46, %47, %48 in 2 : vector<2x16x128xf32>, vector<2x16x128xf32>, vector<2x16x128xf32> -> vector<2x16x384xf32>
    %50 = vector.shape_cast %49 : vector<2x16x384xf32> to vector<32x384xf32>
    %cst_63 = arith.constant dense<0.000000e+00> : vector<32x128xf32>
    %51 = tpu.matmul %50, %41, %cst_63 {dimension_numbers = #tpu.dot_dimension_numbers<[1], [0], [0], [1], [0, 0, 1, 1], [], []>} : vector<32x384xf32>, vector<384x128xf32>, vector<32x128xf32> -> vector<32x128xf32>
    %52 = vector.broadcast %42 : vector<1x128xf32> to vector<32x128xf32>
    %53 = arith.addf %51, %52 : vector<32x128xf32>
    %54 = vector.shape_cast %53 : vector<32x128xf32> to vector<2x16x128xf32>
    %cst_64 = arith.constant 0.000000e+00 : f32
    %55 = vector.broadcast %cst_64 : f32 to vector<2x16x128xf32>
    %56 = arith.maximumf %54, %55 : vector<2x16x128xf32>
    %c0_65 = arith.constant 0 : index
    %c8_66 = arith.constant 8 : index
    %c0_67 = arith.constant 0 : index
    %57 = vector.load %arg18[%c0_65, %c8_66, %c0_67] : memref<2x24x128xf32, #tpu.memory_space<vmem>>, vector<2x16x128xf32>
    tpu.vector_store %arg18[%c0_65, %c8_66, %c0_67], %56 {strides = array<i32>} : memref<2x24x128xf32, #tpu.memory_space<vmem>>, vector<2x16x128xf32>,
    %c0_68 = arith.constant 0 : index
    %c4_69 = arith.constant 4 : index
    %c0_70 = arith.constant 0 : index
    %58 = vector.load %arg18[%c0_68, %c4_69, %c0_70] : memref<2x24x128xf32, #tpu.memory_space<vmem>>, vector<2x16x128xf32>
    %c0_71 = arith.constant 0 : index
    %c6_72 = arith.constant 6 : index
    %c0_73 = arith.constant 0 : index
    %59 = vector.load %arg18[%c0_71, %c6_72, %c0_73] : memref<2x24x128xf32, #tpu.memory_space<vmem>>, vector<2x16x128xf32>
    %c0_74 = arith.constant 0 : index
    %c8_75 = arith.constant 8 : index
    %c0_76 = arith.constant 0 : index
    %60 = vector.load %arg18[%c0_74, %c8_75, %c0_76] : memref<2x24x128xf32, #tpu.memory_space<vmem>>, vector<2x16x128xf32>
    %61 = tpu.concatenate %58, %59, %60 in 2 : vector<2x16x128xf32>, vector<2x16x128xf32>, vector<2x16x128xf32> -> vector<2x16x384xf32>
    %62 = vector.shape_cast %61 : vector<2x16x384xf32> to vector<32x384xf32>
    %cst_77 = arith.constant dense<0.000000e+00> : vector<32x128xf32>
    %63 = tpu.matmul %62, %43, %cst_77 {dimension_numbers = #tpu.dot_dimension_numbers<[1], [0], [0], [1], [0, 0, 1, 1], [], []>} : vector<32x384xf32>, vector<384x128xf32>, vector<32x128xf32> -> vector<32x128xf32>
    %64 = vector.broadcast %44 : vector<1x128xf32> to vector<32x128xf32>
    %65 = arith.addf %63, %64 : vector<32x128xf32>
    %66 = vector.shape_cast %65 : vector<32x128xf32> to vector<2x16x128xf32>
    %cst_78 = arith.constant 0.000000e+00 : f32
    %67 = vector.broadcast %cst_78 : f32 to vector<2x16x128xf32>
    %68 = arith.maximumf %66, %67 : vector<2x16x128xf32>
    %69 = arith.addf %68, %40 : vector<2x16x128xf32>
    %cst_79 = arith.constant 0.000000e+00 : f32
    %70 = vector.broadcast %cst_79 : f32 to vector<2x16x128xf32>
    %71 = arith.maximumf %69, %70 : vector<2x16x128xf32>
    %cst_80 = arith.constant dense<0xFF800000> : vector<2x128xf32>
    %72 = vector.multi_reduction <maximumf>, %71, %cst_80 [1] : vector<2x16x128xf32> to vector<2x128xf32>
    %c0_81 = arith.constant 0 : index
    %c0_82 = arith.constant 0 : index
    %73 = vector.load %arg11[%c0_81, %c0_82] : memref<128x128xf32, #tpu.memory_space<vmem>>, vector<128x128xf32>
    %c0_83 = arith.constant 0 : index
    %c0_84 = arith.constant 0 : index
    %74 = vector.load %arg12[%c0_83, %c0_84] : memref<1x128xf32, #tpu.memory_space<vmem>>, vector<1x128xf32>
    %c0_85 = arith.constant 0 : index
    %c0_86 = arith.constant 0 : index
    %75 = vector.load %arg13[%c0_85, %c0_86] : memref<1x128xf32, #tpu.memory_space<vmem>>, vector<1x128xf32>
    %c0_87 = arith.constant 0 : index
    %c0_88 = arith.constant 0 : index
    %76 = vector.load %arg14[%c0_87, %c0_88] : memref<1x128xf32, #tpu.memory_space<vmem>>, vector<1x128xf32>
    %c0_89 = arith.constant 0 : index
    %c0_90 = arith.constant 0 : index
    %77 = vector.load %arg15[%c0_89, %c0_90] : memref<128x128xf32, #tpu.memory_space<vmem>>, vector<128x128xf32>
    %c0_91 = arith.constant 0 : index
    %c0_92 = arith.constant 0 : index
    %78 = vector.load %arg16[%c0_91, %c0_92] : memref<1x128xf32, #tpu.memory_space<vmem>>, vector<1x128xf32>
    %cst_93 = arith.constant dense<0.000000e+00> : vector<2x128xf32>
    %79 = tpu.matmul %72, %73, %cst_93 {dimension_numbers = #tpu.dot_dimension_numbers<[1], [0], [0], [1], [0, 0, 1, 1], [], []>} : vector<2x128xf32>, vector<128x128xf32>, vector<2x128xf32> -> vector<2x128xf32>
    %80 = vector.broadcast %74 : vector<1x128xf32> to vector<2x128xf32>
    %81 = arith.addf %79, %80 : vector<2x128xf32>
    %82 = tpu.iota {dimensions = array<i32: 1>} : vector<2x128xi32>
    %c16_i32 = arith.constant 16 : i32
    %83 = vector.broadcast %c16_i32 : i32 to vector<2x128xi32>
    %84 = arith.cmpi slt, %82, %83 : vector<2x128xi32>
    %85 = arith.extui %84 : vector<2x128xi1> to vector<2x128xi32>
    %86 = arith.sitofp %85 : vector<2x128xi32> to vector<2x128xf32>
    %87 = arith.mulf %81, %86 : vector<2x128xf32>
    %cst_94 = arith.constant dense<0.000000e+00> : vector<2xf32>
    %88 = vector.multi_reduction <add>, %87, %cst_94 [1] : vector<2x128xf32> to vector<2xf32>
    %89 = vector.shape_cast %88 : vector<2xf32> to vector<2x1xf32>
    %cst_95 = arith.constant 6.250000e-02 : f32
    %90 = vector.broadcast %cst_95 : f32 to vector<2x1xf32>
    %91 = arith.mulf %89, %90 : vector<2x1xf32>
    %92 = vector.broadcast %91 : vector<2x1xf32> to vector<2x128xf32>
    %93 = arith.subf %81, %92 : vector<2x128xf32>
    %94 = arith.mulf %93, %86 : vector<2x128xf32>
    %95 = arith.mulf %94, %94 : vector<2x128xf32>
    %cst_96 = arith.constant dense<0.000000e+00> : vector<2xf32>
    %96 = vector.multi_reduction <add>, %95, %cst_96 [1] : vector<2x128xf32> to vector<2xf32>
    %97 = vector.shape_cast %96 : vector<2xf32> to vector<2x1xf32>
    %cst_97 = arith.constant 6.250000e-02 : f32
    %98 = vector.broadcast %cst_97 : f32 to vector<2x1xf32>
    %99 = arith.mulf %97, %98 : vector<2x1xf32>
    %cst_98 = arith.constant 9.99999974E-6 : f32
    %100 = vector.broadcast %cst_98 : f32 to vector<2x1xf32>
    %101 = arith.addf %99, %100 : vector<2x1xf32>
    %102 = math.rsqrt %101 : vector<2x1xf32>
    %103 = vector.broadcast %102 : vector<2x1xf32> to vector<2x128xf32>
    %104 = arith.mulf %94, %103 : vector<2x128xf32>
    %105 = vector.broadcast %75 : vector<1x128xf32> to vector<2x128xf32>
    %106 = arith.mulf %104, %105 : vector<2x128xf32>
    %107 = vector.broadcast %76 : vector<1x128xf32> to vector<2x128xf32>
    %108 = arith.addf %106, %107 : vector<2x128xf32>
    %109 = arith.negf %108 : vector<2x128xf32>
    %110 = math.exp %109 : vector<2x128xf32>
    %cst_99 = arith.constant 1.000000e+00 : f32
    %111 = vector.broadcast %cst_99 : f32 to vector<2x128xf32>
    %112 = arith.addf %111, %110 : vector<2x128xf32>
    %113 = arith.divf %111, %112 : vector<2x128xf32>
    %114 = arith.mulf %108, %113 : vector<2x128xf32>
    %cst_100 = arith.constant dense<0.000000e+00> : vector<2x128xf32>
    %115 = tpu.matmul %114, %77, %cst_100 {dimension_numbers = #tpu.dot_dimension_numbers<[1], [0], [0], [1], [0, 0, 1, 1], [], []>} : vector<2x128xf32>, vector<128x128xf32>, vector<2x128xf32> -> vector<2x128xf32>
    %116 = vector.broadcast %78 : vector<1x128xf32> to vector<2x128xf32>
    %117 = arith.addf %115, %116 : vector<2x128xf32>
    %118 = tpu.iota {dimensions = array<i32: 1>} : vector<2x128xi32>
    %c8_i32 = arith.constant 8 : i32
    %119 = vector.broadcast %c8_i32 : i32 to vector<2x128xi32>
    %120 = arith.cmpi slt, %118, %119 : vector<2x128xi32>
    %cst_101 = arith.constant -1.000000e+30 : f32
    %121 = vector.broadcast %cst_101 : f32 to vector<2x128xf32>
    %122 = arith.select %120, %117, %121 : vector<2x128xi1>, vector<2x128xf32>
    %cst_102 = arith.constant dense<0xFF800000> : vector<2xf32>
    %123 = vector.multi_reduction <maximumf>, %122, %cst_102 [1] : vector<2x128xf32> to vector<2xf32>
    %124 = vector.shape_cast %123 : vector<2xf32> to vector<2x1xf32>
    %125 = vector.broadcast %124 : vector<2x1xf32> to vector<2x128xf32>
    %126 = arith.subf %122, %125 : vector<2x128xf32>
    %127 = math.exp %126 : vector<2x128xf32>
    %cst_103 = arith.constant 0.000000e+00 : f32
    %128 = vector.broadcast %cst_103 : f32 to vector<2x128xf32>
    %129 = arith.select %120, %127, %128 : vector<2x128xi1>, vector<2x128xf32>
    %cst_104 = arith.constant dense<0.000000e+00> : vector<2xf32>
    %130 = vector.multi_reduction <add>, %129, %cst_104 [1] : vector<2x128xf32> to vector<2xf32>
    %131 = vector.shape_cast %130 : vector<2xf32> to vector<2x1xf32>
    %132 = tpu.reciprocal %131 {approx = true} : vector<2x1xf32> -> vector<2x1xf32>
    %133 = vector.broadcast %132 : vector<2x1xf32> to vector<2x128xf32>
    %134 = arith.mulf %129, %133 : vector<2x128xf32>
    %cst_105 = arith.constant 0.000000e+00 : f32
    %cst_106 = arith.constant 1.000000e-01 : f32
    %135 = vector.broadcast %cst_105 : f32 to vector<2x128xf32>
    %136 = arith.maximumf %135, %134 : vector<2x128xf32>
    %137 = vector.broadcast %cst_106 : f32 to vector<2x128xf32>
    %138 = arith.minimumf %137, %136 : vector<2x128xf32>
    %cst_107 = arith.constant 0.000000e+00 : f32
    %139 = vector.broadcast %cst_107 : f32 to vector<2x128xf32>
    %140 = arith.select %120, %138, %139 : vector<2x128xi1>, vector<2x128xf32>
    %cst_108 = arith.constant dense<0.000000e+00> : vector<2xf32>
    %141 = vector.multi_reduction <add>, %140, %cst_108 [1] : vector<2x128xf32> to vector<2xf32>
    %142 = vector.shape_cast %141 : vector<2xf32> to vector<2x1xf32>
    %cst_109 = arith.constant 9.99999993E-9 : f32
    %143 = vector.broadcast %cst_109 : f32 to vector<2x1xf32>
    %144 = arith.addf %142, %143 : vector<2x1xf32>
    %145 = tpu.reciprocal %144 {approx = true} : vector<2x1xf32> -> vector<2x1xf32>
    %146 = vector.broadcast %145 : vector<2x1xf32> to vector<2x128xf32>
    %147 = arith.mulf %140, %146 : vector<2x128xf32>
    %c0_110 = arith.constant 0 : index
    %c0_111 = arith.constant 0 : index
    %148 = vector.load %arg17[%c0_110, %c0_111] : memref<2x128xf32, #tpu.memory_space<vmem>>, vector<2x128xf32>
    tpu.vector_store %arg17[%c0_110, %c0_111], %147 {strides = array<i32>} : memref<2x128xf32, #tpu.memory_space<vmem>>, vector<2x128xf32>,
    return
  }
}

</mosaic_0001>

<bundles_post_ra>
// kernel: portfolio_tcn_forward.1
= control target key start
LH: loop header
LB: loop body
LE: loop exit
PB: predicated region body
PF: predicated region fallthrough
CT: control target
= control target key end

     0   :  { %s3020_s0 = inlined_call_operand.vmem [shape: f32[2,16,128], index: 0, kind: input, shape index: {}]   ;;  %s3021_s1 = inlined_call_operand.vmem [shape: f32[384,128], index: 1, kind: input, shape index: {}]   ;;  %s3022_s2 = inlined_call_operand.vmem [shape: f32[1,128], index: 2, kind: input, shape index: {}]   ;;  %s3023_s3 = inlined_call_operand.vmem [shape: f32[384,128], index: 3, kind: input, shape index: {}]   ;;  %s3024_s4 = inlined_call_operand.vmem [shape: f32[1,128], index: 4, kind: input, shape index: {}]   ;;  %s3025_s5 = inlined_call_operand.vmem [shape: f32[128,128], index: 5, kind: input, shape index: {}]   ;;  %s3026_s6 = inlined_call_operand.vmem [shape: f32[1,128], index: 6, kind: input, shape index: {}]   ;;  %s3027_s7 = inlined_call_operand.vmem [shape: f32[384,128], index: 7, kind: input, shape index: {}]   ;;  %s3028_s8 = inlined_call_operand.vmem [shape: f32[1,128], index: 8, kind: input, shape index: {}]   ;;  %s3029_s9 = inlined_call_operand.vmem [shape: f32[384,128], index: 9, kind: input, shape index: {}]   ;;  %s3030_s10 = inlined_call_operand.vmem [shape: f32[1,128], index: 10, kind: input, shape index: {}]   ;;  %s3031_s11 = inlined_call_operand.vmem [shape: f32[128,128], index: 11, kind: input, shape index: {}]   ;;  %s3032_s12 = inlined_call_operand.vmem [shape: f32[1,128], index: 12, kind: input, shape index: {}]   ;;  %s3033_s13 = inlined_call_operand.vmem [shape: f32[1,128], index: 13, kind: input, shape index: {}]   ;;  %s3034_s14 = inlined_call_operand.vmem [shape: f32[1,128], index: 14, kind: input, shape index: {}]   ;;  %s3035_s15 = inlined_call_operand.vmem [shape: f32[128,128], index: 15, kind: input, shape index: {}]   ;;  %s3036_s16 = inlined_call_operand.vmem [shape: f32[1,128], index: 16, kind: input, shape index: {}]   ;;  %s3037_s17 = inlined_call_operand.hbm [shape: f32[2,128], index: 17, kind: output, shape index: {}]  }
   0x1   :  { %3040 = sst [smem:[#allocation6_spill]] %s3020_s0 }
   0x2   :  { %3041 = sst [smem:[#allocation7_spill]] %s3021_s1 }
   0x3   :  { %s3042_s26 = sld [smem:[#allocation7_spill]]  ;;  %v2073_v5 = vmov 0.0  }
   0x4   :  { %61 = vst [vmem:[#allocation2] sm:$0xff] %v2073_v5  ;;  %62 = vst [vmem:[#allocation2 + $0x18] sm:$0xff] %v2073_v5  ;;  %s3043_s24 = sld [smem:[#allocation6_spill]] }
   0x9   :  { %v94_v0 = vld [vmem:[%s3042_s26 + $0xf8] sm:$0xff]  ;;  %v93_v2 = vld [vmem:[%s3042_s26 + $0xf0] sm:$0xff]  ;;  %v92_v6 = vld [vmem:[%s3042_s26 + $0xe8] sm:$0xff] }
   0xa   :  { %v78_v1 = vld [vmem:[%s3042_s26 + $0x78] sm:$0xff]  ;;  %1465 = vmatprep.subr.mxu0 %v94_v0  ;;  %v77_v4 = vld [vmem:[%s3042_s26 + $0x70] sm:$0xff]  ;;  %v76_v8 = vld [vmem:[%s3042_s26 + $0x68] sm:$0xff] }
   0xb   :  { %v110_v3 = vld [vmem:[%s3042_s26 + $0x178] sm:$0xff]  ;;  %1466 = vmatpush3.msra.mxu0 %v78_v1  ;;  %v109_v7 = vld [vmem:[%s3042_s26 + $0x170] sm:$0xff]  ;;  %v108_v9 = vld [vmem:[%s3042_s26 + $0x168] sm:$0xff] }
   0xc   :  { %1775 = vmatprep.subr.mxu1 %v110_v3  ;;  %1467 = vmatprep.subr.mxu0 %v93_v2  ;;  %v91_v10 = vld [vmem:[%s3042_s26 + $0xe0] sm:$0xff]  ;;  %v90_v13 = vld [vmem:[%s3042_s26 + $0xd8] sm:$0xff]  ;;  %v89_v16 = vld [vmem:[%s3042_s26 + $0xd0] sm:$0xff] }
   0xd   :  { %1776 = vmatpush3.msra.mxu1 %v110_v3  ;;  %1468 = vmatpush3.msra.mxu0 %v77_v4  ;;  %v75_v11 = vld [vmem:[%s3042_s26 + $0x60] sm:$0xff]  ;;  %v74_v14 = vld [vmem:[%s3042_s26 + $0x58] sm:$0xff]  ;;  %v73_v17 = vld [vmem:[%s3042_s26 + $0x50] sm:$0xff] }
   0xe   :  { %1777 = vmatprep.subr.mxu1 %v109_v7  ;;  %1469 = vmatprep.subr.mxu0 %v92_v6  ;;  %v107_v12 = vld [vmem:[%s3042_s26 + $0x160] sm:$0xff]  ;;  %v106_v15 = vld [vmem:[%s3042_s26 + $0x158] sm:$0xff]  ;;  %v105_v18 = vld [vmem:[%s3042_s26 + $0x150] sm:$0xff] }
   0xf   :  { %1778 = vmatpush3.msra.mxu1 %v109_v7  ;;  %1470 = vmatpush3.msra.mxu0 %v76_v8  ;;  %v88_v19 = vld [vmem:[%s3042_s26 + $0xc8] sm:$0xff]  ;;  %v87_v22 = vld [vmem:[%s3042_s26 + $0xc0] sm:$0xff]  ;;  %v86_v25 = vld [vmem:[%s3042_s26 + $0xb8] sm:$0xff] }
  0x10   :  { %1779 = vmatprep.subr.mxu1 %v108_v9  ;;  %1471 = vmatprep.subr.mxu0 %v91_v10  ;;  %v72_v20 = vld [vmem:[%s3042_s26 + $0x48] sm:$0xff]  ;;  %v71_v23 = vld [vmem:[%s3042_s26 + $0x40] sm:$0xff]  ;;  %v70_v26 = vld [vmem:[%s3042_s26 + $0x38] sm:$0xff] }
  0x11   :  { %1780 = vmatpush3.msra.mxu1 %v108_v9  ;;  %1472 = vmatpush3.msra.mxu0 %v75_v11  ;;  %v104_v21 = vld [vmem:[%s3042_s26 + $0x148] sm:$0xff]  ;;  %v103_v24 = vld [vmem:[%s3042_s26 + $0x140] sm:$0xff]  ;;  %v102_v27 = vld [vmem:[%s3042_s26 + $0x138] sm:$0xff] }
  0x12   :  { %1781 = vmatprep.subr.mxu1 %v107_v12  ;;  %1473 = vmatprep.subr.mxu0 %v90_v13  ;;  %v2250_v28 = vld [vmem:[%s3043_s24] sm:$0xff]  ;;  %v85_v29 = vld [vmem:[%s3042_s26 + $0xb0] sm:$0xff]  ;;  %v2259_v30 = vld [vmem:[%s3043_s24 + $0x8] sm:$0xff] }
  0x13   :  { %1782 = vmatpush3.msra.mxu1 %v107_v12  ;;  %1474 = vmatpush3.msra.mxu0 %v74_v14  ;;  %161 = vst [vmem:[#allocation2 + $0x8] sm:$0xff] %v2250_v28  ;;  %v2264_v31 = vld [vmem:[%s3043_s24 + $0x10] sm:$0xff]  ;;  %162 = vst [vmem:[#allocation2 + $0x10] sm:$0xff] %v2259_v30  ;;  %v2277_v34 = vld [vmem:[%s3043_s24 + $0x18] sm:$0xff] }
  0x14   :  { %1783 = vmatprep.subr.mxu1 %v106_v15  ;;  %1475 = vmatprep.subr.mxu0 %v89_v16  ;;  %v69_v32 = vld [vmem:[%s3042_s26 + $0x30] sm:$0xff]  ;;  %163 = vst [vmem:[#allocation2 + $0x20] sm:$0xff] %v2264_v31  ;;  %v84_v35 = vld [vmem:[%s3042_s26 + $0xa8] sm:$0xff]  ;;  %164 = vst [vmem:[#allocation2 + $0x28] sm:$0xff] %v2277_v34 }
  0x15   :  { %1784 = vmatpush3.msra.mxu1 %v106_v15  ;;  %1476 = vmatpush3.msra.mxu0 %v73_v17  ;;  %v101_v33 = vld [vmem:[%s3042_s26 + $0x130] sm:$0xff]  ;;  %v68_v36 = vld [vmem:[%s3042_s26 + $0x28] sm:$0xff]  ;;  %v83_v38 = vld [vmem:[%s3042_s26 + $0xa0] sm:$0xff] }
  0x16   :  { %1785 = vmatprep.subr.mxu1 %v105_v18  ;;  %1477 = vmatprep.subr.mxu0 %v88_v19  ;;  %v100_v37 = vld [vmem:[%s3042_s26 + $0x128] sm:$0xff]  ;;  %v67_v39 = vld [vmem:[%s3042_s26 + $0x20] sm:$0xff]  ;;  %v82_v41 = vld [vmem:[%s3042_s26 + $0x98] sm:$0xff] }
  0x17   :  { %1786 = vmatpush3.msra.mxu1 %v105_v18  ;;  %1478 = vmatpush3.msra.mxu0 %v72_v20  ;;  %v99_v40 = vld [vmem:[%s3042_s26 + $0x120] sm:$0xff]  ;;  %v66_v42 = vld [vmem:[%s3042_s26 + $0x18] sm:$0xff]  ;;  %v81_v44 = vld [vmem:[%s3042_s26 + $0x90] sm:$0xff] }
  0x18   :  { %1787 = vmatprep.subr.mxu1 %v104_v21  ;;  %1479 = vmatprep.subr.mxu0 %v87_v22  ;;  %v98_v43 = vld [vmem:[%s3042_s26 + $0x118] sm:$0xff]  ;;  %v65_v45 = vld [vmem:[%s3042_s26 + $0x10] sm:$0xff]  ;;  %v80_v47 = vld [vmem:[%s3042_s26 + $0x88] sm:$0xff] }
  0x19   :  { %1788 = vmatpush3.msra.mxu1 %v104_v21  ;;  %1480 = vmatpush3.msra.mxu0 %v71_v23  ;;  %v97_v46 = vld [vmem:[%s3042_s26 + $0x110] sm:$0xff] }
  0x1a   :  { %1789 = vmatprep.subr.mxu1 %v103_v24  ;;  %1481 = vmatprep.subr.mxu0 %v86_v25 }
  0x1b   :  { %1790 = vmatpush3.msra.mxu1 %v103_v24  ;;  %1482 = vmatpush3.msra.mxu0 %v70_v26 }
  0x1c   :  { %1791 = vmatprep.subr.mxu1 %v102_v27  ;;  %1483 = vmatprep.subr.mxu0 %v85_v29 }
  0x1d   :  { %1792 = vmatpush3.msra.mxu1 %v102_v27  ;;  %1484 = vmatpush3.msra.mxu0 %v69_v32 }
  0x1e   :  { %1793 = vmatprep.subr.mxu1 %v101_v33  ;;  %1485 = vmatprep.subr.mxu0 %v84_v35 }
  0x1f   :  { %1794 = vmatpush3.msra.mxu1 %v101_v33  ;;  %1486 = vmatpush3.msra.mxu0 %v68_v36 }
  0x20   :  { %1795 = vmatprep.subr.mxu1 %v100_v37  ;;  %1487 = vmatprep.subr.mxu0 %v83_v38 }
  0x21   :  { %1796 = vmatpush3.msra.mxu1 %v100_v37  ;;  %1488 = vmatpush3.msra.mxu0 %v67_v39 }
  0x22   :  { %1797 = vmatprep.subr.mxu1 %v99_v40  ;;  %1489 = vmatprep.subr.mxu0 %v82_v41 }
  0x23   :  { %1798 = vmatpush3.msra.mxu1 %v99_v40  ;;  %1490 = vmatpush3.msra.mxu0 %v66_v42 }
  0x24   :  { %1799 = vmatprep.subr.mxu1 %v98_v43 }
  0x25   :  { %22 = vsyncpa [#allocation4], 0  ;;  %1491 = vmatprep.subr.mxu0 %v81_v44  ;;  %1800 = vmatpush3.msra.mxu1 %v98_v43  ;;  %v64_v48 = vld [vmem:[%s3042_s26 + $0x8] sm:$0xff]  ;;  %v79_v50 = vld [vmem:[%s3042_s26 + $0x80] sm:$0xff]  ;;  %vm2074_vm0 = vmmov 0   ;;  %vm1225_vm1 = vcmask 1041409  }
  0x26   :  { %v96_v49 = vld [vmem:[%s3042_s26 + $0x108] sm:$0xff]  ;;  %1492 = vmatpush3.msra.mxu0 %v65_v45  ;;  %1801 = vmatprep.subr.mxu1 %v97_v46  ;;  %v63_v52 = vld [vmem:[%s3042_s26] sm:$0xff]  ;;  %v143_v56 = vld [vmem:[%s3023_s3 + $0xf8] sm:$0xff]  ;;  %vm1304_vm3 = vcmask 1041408  }
  0x27   :  { %v169_v51 = vld [vmem:[#allocation2 + $0x7] sm:$0xff]  ;;  %1493 = vmatprep.subr.mxu0 %v80_v47  ;;  %1802 = vmatpush3.msra.mxu1 %v97_v46  ;;  %v170_v55 = vld [vmem:[#allocation2 + $0xf] sm:$0xff]  ;;  %v159_v58 = vld [vmem:[%s3023_s3 + $0x178] sm:$0xff] }
  0x28   :  { %1494 = vmatpush3.msra.mxu0 %v64_v48  ;;  %1803 = vmatprep.subr.mxu1 %v96_v49  ;;  %v165_v53 = vld [vmem:[#allocation2 + $0x6] sm:$0xff]  ;;  %v166_v57 = vld [vmem:[#allocation2 + $0xe] sm:$0xff]  ;;  %v127_v60 = vld [vmem:[%s3023_s3 + $0x78] sm:$0xff] }
  0x29   :  { %v95_v54 = vld [vmem:[%s3042_s26 + $0x100] sm:$0xff]  ;;  %1495 = vmatprep.subr.mxu0 %v79_v50  ;;  %247 = vmatprep.mubr.f32.mxu0 %v169_v51  ;;  %v142_v61 = vld [vmem:[%s3023_s3 + $0xf0] sm:$0xff]  ;;  %v141_v0 = vld [vmem:[%s3023_s3 + $0xe8] sm:$0xff] }
  0x2a   :  { %1496 = vmatpush3.msra.mxu0 %v63_v52  ;;  %1804 = vmatpush3.msra.mxu1 %v96_v49  ;;  %v171_v59 = vld [vmem:[#allocation2 + $0x1f] sm:$0xff]  ;;  %v126_v62 = vld [vmem:[%s3023_s3 + $0x70] sm:$0xff]  ;;  %v172_v1 = vld [vmem:[#allocation2 + $0x27] sm:$0xff] }
  0x2b   :  { %248 = vmatmul.mubr.f32.vlgmr.msra.gmra.mxu0 %v165_v53  ;;  %1805 = vmatprep.subr.mxu1 %v95_v54  ;;  %v167_v63 = vld [vmem:[#allocation2 + $0x1e] sm:$0xff]  ;;  %v125_v2 = vld [vmem:[%s3023_s3 + $0x68] sm:$0xff]  ;;  %v158_v4 = vld [vmem:[%s3023_s3 + $0x170] sm:$0xff] }
  0x2c   :  { %1806 = vmatpush3.msra.mxu1 %v95_v54  ;;  %1807 = vmatprep.mubr.f32.mxu1 %v2250_v28  ;;  %v140_v3 = vld [vmem:[%s3023_s3 + $0xe0] sm:$0xff]  ;;  %v139_v7 = vld [vmem:[%s3023_s3 + $0xd8] sm:$0xff]  ;;  %v157_v8 = vld [vmem:[%s3023_s3 + $0x168] sm:$0xff] }
  0x2d   :  { %1808 = vmatmul.mubr.f32.vlgmr.msra.gmra.mxu1 %v2259_v30  ;;  %252 = vmatprep.mubr.f32.mxu0 %v170_v55  ;;  %v124_v5 = vld [vmem:[%s3023_s3 + $0x60] sm:$0xff]  ;;  %v123_v9 = vld [vmem:[%s3023_s3 + $0x58] sm:$0xff]  ;;  %v138_v10 = vld [vmem:[%s3023_s3 + $0xd0] sm:$0xff] }
  0x2e   :  { %1810 = vmatprep.mubr.f32.mxu1 %v2264_v31  ;;  %1529 = vmatprep.subr.mxu0 %v143_v56  ;;  %v168_v6 = vld [vmem:[#allocation2 + $0x26] sm:$0xff]  ;;  %v122_v12 = vld [vmem:[%s3023_s3 + $0x50] sm:$0xff]  ;;  %v155_v14 = vld [vmem:[%s3023_s3 + $0x158] sm:$0xff] }
  0x2f   :  { %253 = vmatmul.mubr.f32.gmra.mxu0 %v166_v57  ;;  %1813 = vmatprep.subr.mxu1 %v159_v58  ;;  %v156_v11 = vld [vmem:[%s3023_s3 + $0x160] sm:$0xff]  ;;  %v137_v13 = vld [vmem:[%s3023_s3 + $0xc8] sm:$0xff]  ;;  %v154_v15 = vld [vmem:[%s3023_s3 + $0x150] sm:$0xff] }
  0x30   :  { %257 = vmatprep.mubr.f32.mxu0 %v171_v59  ;;  %1530 = vmatpush3.msra.mxu0 %v127_v60  ;;  %v153_v16 = vld [vmem:[%s3023_s3 + $0x148] sm:$0xff]  ;;  %v152_v17 = vld [vmem:[%s3023_s3 + $0x140] sm:$0xff]  ;;  %v151_v18 = vld [vmem:[%s3023_s3 + $0x138] sm:$0xff] }
  0x31   :  { %1811 = vmatmul.mubr.f32.gmra.mxu1 %v2277_v34  ;;  %1531 = vmatprep.subr.mxu0 %v142_v61  ;;  %v121_v19 = vld [vmem:[%s3023_s3 + $0x48] sm:$0xff]  ;;  %v136_v20 = vld [vmem:[%s3023_s3 + $0xc0] sm:$0xff]  ;;  %v150_v21 = vld [vmem:[%s3023_s3 + $0x130] sm:$0xff] }
  0x32   :  { %1532 = vmatpush3.msra.mxu0 %v126_v62  ;;  %1814 = vmatpush3.msra.mxu1 %v159_v58  ;;  %v120_v22 = vld [vmem:[%s3023_s3 + $0x40] sm:$0xff]  ;;  %v135_v23 = vld [vmem:[%s3023_s3 + $0xb8] sm:$0xff]  ;;  %v149_v24 = vld [vmem:[%s3023_s3 + $0x128] sm:$0xff] }
  0x33   :  { %258 = vmatmul.mubr.f32.gmra.mxu0 %v167_v63  ;;  %1533 = vmatprep.subr.mxu0 %v141_v0  ;;  %v119_v25 = vld [vmem:[%s3023_s3 + $0x38] sm:$0xff]  ;;  %v134_v26 = vld [vmem:[%s3023_s3 + $0xb0] sm:$0xff]  ;;  %v148_v27 = vld [vmem:[%s3023_s3 + $0x120] sm:$0xff] }
  0x34   :  { %262 = vmatprep.mubr.f32.mxu0 %v172_v1  ;;  %1534 = vmatpush3.msra.mxu0 %v125_v2  ;;  %v118_v29 = vld [vmem:[%s3023_s3 + $0x30] sm:$0xff]  ;;  %v133_v32 = vld [vmem:[%s3023_s3 + $0xa8] sm:$0xff]  ;;  %v147_v33 = vld [vmem:[%s3023_s3 + $0x118] sm:$0xff] }
  0x35   :  { %1535 = vmatprep.subr.mxu0 %v140_v3  ;;  %1815 = vmatprep.subr.mxu1 %v158_v4  ;;  %v117_v35 = vld [vmem:[%s3023_s3 + $0x28] sm:$0xff]  ;;  %v132_v36 = vld [vmem:[%s3023_s3 + $0xa0] sm:$0xff]  ;;  %v146_v37 = vld [vmem:[%s3023_s3 + $0x110] sm:$0xff] }
  0x36   :  { %1536 = vmatpush3.msra.mxu0 %v124_v5  ;;  %1816 = vmatpush3.msra.mxu1 %v158_v4  ;;  %v116_v38 = vld [vmem:[%s3023_s3 + $0x20] sm:$0xff]  ;;  %v131_v39 = vld [vmem:[%s3023_s3 + $0x98] sm:$0xff]  ;;  %v145_v40 = vld [vmem:[%s3023_s3 + $0x108] sm:$0xff] }
  0x37   :  { %263 = vmatmul.mubr.f32.gmra.mxu0 %v168_v6  ;;  %1537 = vmatprep.subr.mxu0 %v139_v7  ;;  %v115_v41 = vld [vmem:[%s3023_s3 + $0x18] sm:$0xff]  ;;  %v130_v42 = vld [vmem:[%s3023_s3 + $0x90] sm:$0xff]  ;;  %v144_v44 = vld [vmem:[%s3023_s3 + $0x100] sm:$0xff] }
  0x38   :  { %1817 = vmatprep.subr.mxu1 %v157_v8  ;;  %1538 = vmatpush3.msra.mxu0 %v123_v9  ;;  %v114_v43 = vld [vmem:[%s3023_s3 + $0x10] sm:$0xff]  ;;  %v129_v45 = vld [vmem:[%s3023_s3 + $0x88] sm:$0xff]  ;;  %v128_v47 = vld [vmem:[%s3023_s3 + $0x80] sm:$0xff] }
  0x39   :  { %1818 = vmatpush3.msra.mxu1 %v157_v8  ;;  %1539 = vmatprep.subr.mxu0 %v138_v10  ;;  %v113_v46 = vld [vmem:[%s3023_s3 + $0x8] sm:$0xff]  ;;  %v112_v48 = vld [vmem:[%s3023_s3] sm:$0xff]  ;;  %v568_v49 = vld [vmem:[%s3025_s5 + $0x78] sm:$0xff] }
  0x3a   :  { %1819 = vmatprep.subr.mxu1 %v156_v11  ;;  %1540 = vmatpush3.msra.mxu0 %v122_v12  ;;  %v1454_v53 = vld [vmem:[%s3022_s2] ss:$0 sm:$0xff] }
  0x3b   :  { %1820 = vmatpush3.msra.mxu1 %v156_v11  ;;  %1541 = vmatprep.subr.mxu0 %v137_v13 }
  0x3c   :  { %1821 = vmatprep.subr.mxu1 %v155_v14  ;;  %1542 = vmatpush3.msra.mxu0 %v121_v19 }
  0x3d   :  { %1822 = vmatpush3.msra.mxu1 %v155_v14  ;;  %1543 = vmatprep.subr.mxu0 %v136_v20 }
  0x3e   :  { %1823 = vmatprep.subr.mxu1 %v154_v15  ;;  %1544 = vmatpush3.msra.mxu0 %v120_v22  ;;  %v564_v22 = vld [vmem:[%s3025_s5 + $0x58] sm:$0xff] }
  0x3f   :  { %1824 = vmatpush3.msra.mxu1 %v154_v15  ;;  %1545 = vmatprep.subr.mxu0 %v135_v23 }
  0x40   :  { %1825 = vmatprep.subr.mxu1 %v153_v16  ;;  %1546 = vmatpush3.msra.mxu0 %v119_v25  ;;  %v563_v25 = vld [vmem:[%s3025_s5 + $0x50] sm:$0xff] }
  0x41   :  { %1826 = vmatpush3.msra.mxu1 %v153_v16  ;;  %1547 = vmatprep.subr.mxu0 %v134_v26  ;;  %v567_v16 = vld [vmem:[%s3025_s5 + $0x70] sm:$0xff]  ;;  %v562_v26 = vld [vmem:[%s3025_s5 + $0x48] sm:$0xff] }
  0x42   :  { %1827 = vmatprep.subr.mxu1 %v152_v17  ;;  %1548 = vmatpush3.msra.mxu0 %v118_v29 }
  0x43   :  { %1828 = vmatpush3.msra.mxu1 %v152_v17  ;;  %1549 = vmatprep.subr.mxu0 %v133_v32  ;;  %v561_v32 = vld [vmem:[%s3025_s5 + $0x40] sm:$0xff] }
  0x44   :  { %1829 = vmatprep.subr.mxu1 %v151_v18  ;;  %1550 = vmatpush3.msra.mxu0 %v117_v35  ;;  %v559_v35 = vld [vmem:[%s3025_s5 + $0x30] sm:$0xff] }
  0x45   :  { %1830 = vmatpush3.msra.mxu1 %v151_v18  ;;  %1551 = vmatprep.subr.mxu0 %v132_v36  ;;  %v566_v18 = vld [vmem:[%s3025_s5 + $0x68] sm:$0xff] }
  0x46   :  { %1831 = vmatprep.subr.mxu1 %v150_v21  ;;  %1552 = vmatpush3.msra.mxu0 %v116_v38  ;;  %v558_v36 = vld [vmem:[%s3025_s5 + $0x28] sm:$0xff]  ;;  %v555_v38 = vld [vmem:[%s3025_s5 + $0x10] sm:$0xff] }
  0x47   :  { %1832 = vmatpush3.msra.mxu1 %v150_v21  ;;  %1553 = vmatprep.subr.mxu0 %v131_v39  ;;  %v565_v21 = vld [vmem:[%s3025_s5 + $0x60] sm:$0xff]  ;;  %v554_v39 = vld [vmem:[%s3025_s5 + $0x8] sm:$0xff] }
  0x48   :  { %1833 = vmatprep.subr.mxu1 %v149_v24  ;;  %1554 = vmatpush3.msra.mxu0 %v115_v41  ;;  %v716_v41 = vld [vmem:[%s3027_s7 + $0x178] sm:$0xff] }
  0x49   :  { %1834 = vmatpush3.msra.mxu1 %v149_v24  ;;  %1555 = vmatprep.subr.mxu0 %v130_v42  ;;  %v715_v42 = vld [vmem:[%s3027_s7 + $0x170] sm:$0xff] }
  0x4a   :  { %1835 = vmatprep.subr.mxu1 %v148_v27  ;;  %1556 = vmatpush3.msra.mxu0 %v114_v43  ;;  %v712_v43 = vld [vmem:[%s3027_s7 + $0x158] sm:$0xff] }
  0x4b   :  { %1836 = vmatpush3.msra.mxu1 %v148_v27  ;;  %1557 = vmatprep.subr.mxu0 %v129_v45  ;;  %v699_v45 = vld [vmem:[%s3027_s7 + $0xf0] sm:$0xff] }
  0x4c   :  { %1837 = vmatprep.subr.mxu1 %v147_v33  ;;  %1558 = vmatpush3.msra.mxu0 %v113_v46  ;;  %v711_v46 = vld [vmem:[%s3027_s7 + $0x150] sm:$0xff] }
  0x4d   :  { %1838 = vmatpush3.msra.mxu1 %v147_v33  ;;  %1559 = vmatprep.subr.mxu0 %v128_v47  ;;  %v560_v33 = vld [vmem:[%s3025_s5 + $0x38] sm:$0xff]  ;;  %v683_v47 = vld [vmem:[%s3027_s7 + $0x70] sm:$0xff] }
  0x4e   :  { %1839 = vmatprep.subr.mxu1 %v146_v37  ;;  %1560 = vmatpush3.msra.mxu0 %v112_v48  ;;  %v698_v48 = vld [vmem:[%s3027_s7 + $0xe8] sm:$0xff] }
  0x4f   :  { %1840 = vmatpush3.msra.mxu1 %v146_v37  ;;  %1851 = vmatprep.subr.mxu0 %v568_v49  ;;  %v557_v37 = vld [vmem:[%s3025_s5 + $0x20] sm:$0xff] }
  0x50   :  { %1841 = vmatprep.subr.mxu1 %v145_v40 }
  0x51   :  { %1842 = vmatpush3.msra.mxu1 %v145_v40  ;;  %v553_v40 = vld [vmem:[%s3025_s5] sm:$0xff] }
  0x52   :  { %1843 = vmatprep.subr.mxu1 %v144_v44 }
  0x53   :  { %1844 = vmatpush3.msra.mxu1 %v144_v44  ;;  %v684_v44 = vld [vmem:[%s3027_s7 + $0x78] sm:$0xff] }
  0xeb   :  { %v1497_v50 = vpop.f32.mrf.mxu0 }
  0xed   :  { %v1498_v51 = vpop.f32.mrf.mxu0  ;;  %v1809_v52 = vpop.f32.mrf.mxu1 }
  0xee   :  { %v1499_v54 = vadd.f32 %v1498_v51, %v1497_v50  ;;  %v697_v50 = vld [vmem:[%s3027_s7 + $0xe0] sm:$0xff] }
  0xef   :  { %v1500_v55 = vpop.f32.mrf.mxu0  ;;  %v334_v57 = vpop.f32.mrf.mxu1  ;;  %v681_v51 = vld [vmem:[%s3027_s7 + $0x60] sm:$0xff] }
  0xf0   :  { %v250_v56 = vadd.f32 %v1499_v54, %v1454_v53  ;;  %v710_v54 = vld [vmem:[%s3027_s7 + $0x148] sm:$0xff] }
  0xf1   :  { %v1501_v58 = vpop.f32.mrf.mxu0  ;;  %v1812_v62 = vpop.f32.mrf.mxu1 }
  0xf2   :  { %v335_v59 = vadd.f32 %v334_v57, %v250_v56  ;;  %v1502_v60 = vadd.f32 %v1501_v58, %v1500_v55  ;;  %v709_v55 = vld [vmem:[%s3027_s7 + $0x140] sm:$0xff]  ;;  %v695_v56 = vld [vmem:[%s3027_s7 + $0xd0] sm:$0xff]  ;;  %v708_v58 = vld [vmem:[%s3027_s7 + $0x138] sm:$0xff] }
  0xf3   :  { %v1503_v61 = vpop.f32.mrf.mxu0  ;;  %v344_v5 = vpop.f32.mrf.mxu1  ;;  %v679_v57 = vld [vmem:[%s3027_s7 + $0x50] sm:$0xff] }
  0xf4   :  { %v353_v63 = vmax.f32 %v335_v59, 0.0  ;;  %v255_v0 = vadd.f32 %v1502_v60, %v1454_v53  ;;  %v694_v59 = vld [vmem:[%s3027_s7 + $0xc8] sm:$0xff] }
  0xf5   :  { %v1504_v1 = vpop.f32.mrf.mxu0  ;;  %v678_v60 = vld [vmem:[%s3027_s7 + $0x48] sm:$0xff] }
  0xf6   :  { %357 = vst [vmem:[#allocation2 + $0x8] sm:$0xff] %v353_v63  ;;  %v340_v2 = vadd.f32 %v1809_v52, %v255_v0  ;;  %v1505_v3 = vadd.f32 %v1504_v1, %v1503_v61  ;;  %1845 = vmatprep.mubr.f32.mxu1 %v353_v63  ;;  %v696_v52 = vld [vmem:[%s3027_s7 + $0xd8] sm:$0xff]  ;;  %v707_v61 = vld [vmem:[%s3027_s7 + $0x130] sm:$0xff]  ;;  %v693_v63 = vld [vmem:[%s3027_s7 + $0xc0] sm:$0xff] }
  0xf7   :  { %v1506_v4 = vpop.f32.mrf.mxu0  ;;  %v677_v0 = vld [vmem:[%s3027_s7 + $0x40] sm:$0xff] }
  0xf8   :  { %v354_v6 = vmax.f32 %v340_v2, 0.0  ;;  %v260_v7 = vadd.f32 %v1505_v3, %v1454_v53  ;;  %v705_v1 = vld [vmem:[%s3027_s7 + $0x120] sm:$0xff]  ;;  %v692_v2 = vld [vmem:[%s3027_s7 + $0xb8] sm:$0xff] }
  0xf9   :  { %v1507_v8 = vpop.f32.mrf.mxu0  ;;  %v676_v3 = vld [vmem:[%s3027_s7 + $0x38] sm:$0xff] }
  0xfa   :  { %358 = vst [vmem:[#allocation2 + $0x10] sm:$0xff] %v354_v6  ;;  %v1508_v9 = vadd.f32 %v1507_v8, %v1506_v4  ;;  %v345_v10 = vadd.f32 %v344_v5, %v260_v7  ;;  %1846 = vmatmul.mubr.f32.vlgmr.msra.gmra.mxu1 %v354_v6  ;;  %v704_v4 = vld [vmem:[%s3027_s7 + $0x118] sm:$0xff]  ;;  %v691_v5 = vld [vmem:[%s3027_s7 + $0xb0] sm:$0xff]  ;;  %v690_v8 = vld [vmem:[%s3027_s7 + $0xa8] sm:$0xff] }
  0xfb   :  { %v675_v6 = vld [vmem:[%s3027_s7 + $0x30] sm:$0xff] }
  0xfc   :  { %v265_v11 = vadd.f32 %v1508_v9, %v1454_v53  ;;  %v355_v12 = vmax.f32 %v345_v10, 0.0  ;;  %v680_v53 = vld [vmem:[%s3027_s7 + $0x58] sm:$0xff]  ;;  %v703_v7 = vld [vmem:[%s3027_s7 + $0x110] sm:$0xff]  ;;  %v674_v9 = vld [vmem:[%s3027_s7 + $0x28] sm:$0xff] }
  0xfd   :  { %v365_v13 = vld [vmem:[#allocation2 + $0x7] sm:$0xff] }
  0xfe   :  { %v361_v14 = vld [vmem:[#allocation2 + $0x6] sm:$0xff]  ;;  %v350_v15 = vadd.f32 %v1812_v62, %v265_v11  ;;  %359 = vst [vmem:[#allocation2 + $0x20] sm:$0xff] %v355_v12  ;;  %443 = vmatprep.mubr.f32.mxu0 %v365_v13  ;;  %1848 = vmatprep.mubr.f32.mxu1 %v355_v12 }
  0xff   :  { %444 = vmatmul.mubr.f32.vlgmr.msra.gmra.mxu0 %v361_v14  ;;  %v706_v62 = vld [vmem:[%s3027_s7 + $0x128] sm:$0xff]  ;;  %v689_v11 = vld [vmem:[%s3027_s7 + $0xa0] sm:$0xff]  ;;  %v688_v14 = vld [vmem:[%s3027_s7 + $0x98] sm:$0xff] }
 0x100   :  { %v356_v17 = vmax.f32 %v350_v15, 0.0  ;;  %1852 = vmatpush3.msra.mxu0 %v568_v49  ;;  %v682_v49 = vld [vmem:[%s3027_s7 + $0x68] sm:$0xff]  ;;  %v673_v12 = vld [vmem:[%s3027_s7 + $0x20] sm:$0xff]  ;;  %v672_v15 = vld [vmem:[%s3027_s7 + $0x18] sm:$0xff] }
 0x101   :  { %1853 = vmatprep.subr.mxu0 %v567_v16  ;;  %v366_v19 = vld [vmem:[#allocation2 + $0xf] sm:$0xff]  ;;  %v701_v13 = vld [vmem:[%s3027_s7 + $0x100] sm:$0xff] }
 0x102   :  { %v362_v20 = vld [vmem:[#allocation2 + $0xe] sm:$0xff]  ;;  %360 = vst [vmem:[#allocation2 + $0x28] sm:$0xff] %v356_v17  ;;  %1854 = vmatpush3.msra.mxu0 %v567_v16  ;;  %448 = vmatprep.mubr.f32.mxu0 %v366_v19 }
 0x103   :  { %1855 = vmatprep.subr.mxu0 %v566_v18  ;;  %449 = vmatmul.mubr.f32.gmra.mxu0 %v362_v20  ;;  %v702_v10 = vld [vmem:[%s3027_s7 + $0x108] sm:$0xff]  ;;  %v687_v16 = vld [vmem:[%s3027_s7 + $0x90] sm:$0xff]  ;;  %v685_v20 = vld [vmem:[%s3027_s7 + $0x80] sm:$0xff] }
 0x104   :  { %1856 = vmatpush3.msra.mxu0 %v566_v18  ;;  %1849 = vmatmul.mubr.f32.gmra.mxu1 %v356_v17  ;;  %v671_v17 = vld [vmem:[%s3027_s7 + $0x10] sm:$0xff]  ;;  %v686_v18 = vld [vmem:[%s3027_s7 + $0x88] sm:$0xff] }
 0x105   :  { %1857 = vmatprep.subr.mxu0 %v565_v21  ;;  %v367_v23 = vld [vmem:[#allocation2 + $0x1f] sm:$0xff]  ;;  %v670_v19 = vld [vmem:[%s3027_s7 + $0x8] sm:$0xff] }
 0x106   :  { %v363_v24 = vld [vmem:[#allocation2 + $0x1e] sm:$0xff]  ;;  %1858 = vmatpush3.msra.mxu0 %v565_v21  ;;  %453 = vmatprep.mubr.f32.mxu0 %v367_v23 }
 0x107   :  { %1859 = vmatprep.subr.mxu0 %v564_v22  ;;  %454 = vmatmul.mubr.f32.gmra.mxu0 %v363_v24  ;;  %v669_v21 = vld [vmem:[%s3027_s7] sm:$0xff]  ;;  %v765_v23 = vld [vmem:[%s3029_s9 + $0x178] sm:$0xff] }
 0x108   :  { %1860 = vmatpush3.msra.mxu0 %v564_v22  ;;  %v749_v22 = vld [vmem:[%s3029_s9 + $0xf8] sm:$0xff] }
 0x109   :  { %1861 = vmatprep.subr.mxu0 %v563_v25  ;;  %v368_v27 = vld [vmem:[#allocation2 + $0x27] sm:$0xff] }
 0x10a   :  { %v364_v29 = vld [vmem:[#allocation2 + $0x26] sm:$0xff]  ;;  %1862 = vmatpush3.msra.mxu0 %v563_v25  ;;  %458 = vmatprep.mubr.f32.mxu0 %v368_v27 }
 0x10b   :  { %1863 = vmatprep.subr.mxu0 %v562_v26  ;;  %459 = vmatmul.mubr.f32.gmra.mxu0 %v364_v29 }
 0x10c   :  { %1864 = vmatpush3.msra.mxu0 %v562_v26  ;;  %1883 = vmatprep.mubr.f32.mxu0 %v2250_v28  ;;  %v556_v28 = vld [vmem:[%s3025_s5 + $0x18] sm:$0xff] }
 0x10d   :  { %1865 = vmatprep.subr.mxu0 %v561_v32 }
 0x10e   :  { %1866 = vmatpush3.msra.mxu0 %v561_v32 }
 0x10f   :  { %1867 = vmatprep.subr.mxu0 %v560_v33 }
 0x110   :  { %1868 = vmatpush3.msra.mxu0 %v560_v33 }
 0x111   :  { %1869 = vmatprep.subr.mxu0 %v559_v35 }
 0x112   :  { %1870 = vmatpush3.msra.mxu0 %v559_v35 }
 0x113   :  { %1871 = vmatprep.subr.mxu0 %v558_v36 }
 0x114   :  { %1872 = vmatpush3.msra.mxu0 %v558_v36 }
 0x115   :  { %1873 = vmatprep.subr.mxu0 %v557_v37 }
 0x116   :  { %1874 = vmatpush3.msra.mxu0 %v557_v37 }
 0x117   :  { %1875 = vmatprep.subr.mxu0 %v556_v28 }
 0x118   :  { %1876 = vmatpush3.msra.mxu0 %v556_v28 }
 0x119   :  { %1877 = vmatprep.subr.mxu0 %v555_v38 }
 0x11a   :  { %1878 = vmatpush3.msra.mxu0 %v555_v38  ;;  %v1455_v38 = vld [vmem:[%s3024_s4] ss:$0 sm:$0xff] }
 0x11b   :  { %1879 = vmatprep.subr.mxu0 %v554_v39 }
 0x11c   :  { %1880 = vmatpush3.msra.mxu0 %v554_v39 }
 0x11d   :  { %1881 = vmatprep.subr.mxu0 %v553_v40 }
 0x11e   :  { %1882 = vmatpush3.msra.mxu0 %v553_v40 }
 0x11f   :  { %1884 = vmatmul.mubr.f32.vlgmr.msra.gmra.mxu0 %v2259_v30  ;;  %1889 = vmatprep.subr.mxu0 %v716_v41  ;;  %v714_v30 = vld [vmem:[%s3027_s7 + $0x168] sm:$0xff] }
 0x120   :  { %1886 = vmatprep.mubr.f32.mxu0 %v2264_v31  ;;  %1890 = vmatpush3.msra.mxu0 %v716_v41  ;;  %v700_v31 = vld [vmem:[%s3027_s7 + $0xf8] sm:$0xff] }
 0x121   :  { %1891 = vmatprep.subr.mxu0 %v715_v42  ;;  %1613 = vmatprep.subr.mxu1 %v700_v31 }
 0x122   :  { %1892 = vmatpush3.msra.mxu0 %v715_v42  ;;  %1614 = vmatpush3.msra.mxu1 %v684_v44  ;;  %v1456_v44 = vld [vmem:[%s3026_s6] ss:$0 sm:$0xff] }
 0x123   :  { %1887 = vmatmul.mubr.f32.gmra.mxu0 %v2277_v34  ;;  %1893 = vmatprep.subr.mxu0 %v714_v30  ;;  %v713_v34 = vld [vmem:[%s3027_s7 + $0x160] sm:$0xff] }
 0x124   :  { %1894 = vmatpush3.msra.mxu0 %v714_v30  ;;  %1615 = vmatprep.subr.mxu1 %v699_v45 }
 0x125   :  { %1895 = vmatprep.subr.mxu0 %v713_v34  ;;  %1616 = vmatpush3.msra.mxu1 %v683_v47 }
 0x126   :  { %1896 = vmatpush3.msra.mxu0 %v713_v34  ;;  %1617 = vmatprep.subr.mxu1 %v698_v48 }
 0x127   :  { %1897 = vmatprep.subr.mxu0 %v712_v43  ;;  %1618 = vmatpush3.msra.mxu1 %v682_v49 }
 0x128   :  { %1898 = vmatpush3.msra.mxu0 %v712_v43  ;;  %1619 = vmatprep.subr.mxu1 %v697_v50 }
 0x129   :  { %1899 = vmatprep.subr.mxu0 %v711_v46  ;;  %1620 = vmatpush3.msra.mxu1 %v681_v51 }
 0x12a   :  { %1900 = vmatpush3.msra.mxu0 %v711_v46  ;;  %1621 = vmatprep.subr.mxu1 %v696_v52 }
 0x12b   :  { %1901 = vmatprep.subr.mxu0 %v710_v54  ;;  %1622 = vmatpush3.msra.mxu1 %v680_v53 }
 0x12c   :  { %1902 = vmatpush3.msra.mxu0 %v710_v54  ;;  %1623 = vmatprep.subr.mxu1 %v695_v56 }
 0x12d   :  { %1903 = vmatprep.subr.mxu0 %v709_v55  ;;  %1624 = vmatpush3.msra.mxu1 %v679_v57 }
 0x12e   :  { %1904 = vmatpush3.msra.mxu0 %v709_v55  ;;  %1625 = vmatprep.subr.mxu1 %v694_v59 }
 0x12f   :  { %1905 = vmatprep.subr.mxu0 %v708_v58  ;;  %1626 = vmatpush3.msra.mxu1 %v678_v60 }
 0x130   :  { %1906 = vmatpush3.msra.mxu0 %v708_v58  ;;  %1627 = vmatprep.subr.mxu1 %v693_v63 }
 0x131   :  { %1907 = vmatprep.subr.mxu0 %v707_v61  ;;  %1628 = vmatpush3.msra.mxu1 %v677_v0 }
 0x132   :  { %1908 = vmatpush3.msra.mxu0 %v707_v61  ;;  %1629 = vmatprep.subr.mxu1 %v692_v2 }
 0x133   :  { %1909 = vmatprep.subr.mxu0 %v706_v62  ;;  %1630 = vmatpush3.msra.mxu1 %v676_v3 }
 0x134   :  { %1910 = vmatpush3.msra.mxu0 %v706_v62  ;;  %1631 = vmatprep.subr.mxu1 %v691_v5  ;;  %v764_v5 = vld [vmem:[%s3029_s9 + $0x170] sm:$0xff] }
 0x135   :  { %1911 = vmatprep.subr.mxu0 %v705_v1  ;;  %1632 = vmatpush3.msra.mxu1 %v675_v6 }
 0x136   :  { %1912 = vmatpush3.msra.mxu0 %v705_v1  ;;  %1633 = vmatprep.subr.mxu1 %v690_v8  ;;  %v762_v8 = vld [vmem:[%s3029_s9 + $0x160] sm:$0xff] }
 0x137   :  { %1913 = vmatprep.subr.mxu0 %v704_v4  ;;  %1634 = vmatpush3.msra.mxu1 %v674_v9  ;;  %v761_v9 = vld [vmem:[%s3029_s9 + $0x158] sm:$0xff] }
 0x138   :  { %1914 = vmatpush3.msra.mxu0 %v704_v4  ;;  %1635 = vmatprep.subr.mxu1 %v689_v11 }
 0x139   :  { %1915 = vmatprep.subr.mxu0 %v703_v7  ;;  %1636 = vmatpush3.msra.mxu1 %v673_v12  ;;  %v733_v12 = vld [vmem:[%s3029_s9 + $0x78] sm:$0xff] }
 0x13a   :  { %1916 = vmatpush3.msra.mxu0 %v703_v7  ;;  %1637 = vmatprep.subr.mxu1 %v688_v14  ;;  %v763_v7 = vld [vmem:[%s3029_s9 + $0x168] sm:$0xff] }
 0x13b   :  { %1917 = vmatprep.subr.mxu0 %v702_v10  ;;  %1638 = vmatpush3.msra.mxu1 %v672_v15  ;;  %v732_v15 = vld [vmem:[%s3029_s9 + $0x70] sm:$0xff] }
 0x13c   :  { %1918 = vmatpush3.msra.mxu0 %v702_v10  ;;  %1639 = vmatprep.subr.mxu1 %v687_v16  ;;  %v747_v16 = vld [vmem:[%s3029_s9 + $0xe8] sm:$0xff] }
 0x13d   :  { %1919 = vmatprep.subr.mxu0 %v701_v13  ;;  %1640 = vmatpush3.msra.mxu1 %v671_v17  ;;  %v731_v17 = vld [vmem:[%s3029_s9 + $0x68] sm:$0xff] }
 0x13e   :  { %1920 = vmatpush3.msra.mxu0 %v701_v13  ;;  %1641 = vmatprep.subr.mxu1 %v686_v18  ;;  %v748_v13 = vld [vmem:[%s3029_s9 + $0xf0] sm:$0xff] }
 0x13f   :  { %1642 = vmatpush3.msra.mxu1 %v670_v19  ;;  %1927 = vmatprep.subr.mxu0 %v765_v23  ;;  %v746_v19 = vld [vmem:[%s3029_s9 + $0xe0] sm:$0xff] }
 0x140   :  { %1643 = vmatprep.subr.mxu1 %v685_v20 }
 0x141   :  { %1644 = vmatpush3.msra.mxu1 %v669_v21  ;;  %v730_v21 = vld [vmem:[%s3029_s9 + $0x60] sm:$0xff] }
 0x142   :  { %1677 = vmatprep.subr.mxu1 %v749_v22  ;;  %v745_v22 = vld [vmem:[%s3029_s9 + $0xd8] sm:$0xff] }
 0x1ba   :  { %v1847_v28 = vpop.f32.mrf.mxu1 }
 0x1bc   :  { %v530_v30 = vpop.f32.mrf.mxu1 }
 0x1bf   :  { %v1561_v24 = vpop.f32.mrf.mxu0 }
 0x1c1   :  { %v1562_v25 = vpop.f32.mrf.mxu0 }
 0x1c2   :  { %v1563_v37 = vadd.f32 %v1562_v25, %v1561_v24  ;;  %v744_v25 = vld [vmem:[%s3029_s9 + $0xd0] sm:$0xff] }
 0x1c3   :  { %v1564_v26 = vpop.f32.mrf.mxu0 }
 0x1c4   :  { %v446_v41 = vadd.f32 %v1563_v37, %v1455_v38  ;;  %v1850_v43 = vpop.f32.mrf.mxu1  ;;  %v743_v37 = vld [vmem:[%s3029_s9 + $0xc8] sm:$0xff] }
 0x1c5   :  { %v1565_v27 = vpop.f32.mrf.mxu0 }
 0x1c6   :  { %v1566_v35 = vadd.f32 %v1565_v27, %v1564_v26  ;;  %v531_v45 = vadd.f32 %v530_v30, %v446_v41  ;;  %v540_v51 = vpop.f32.mrf.mxu1  ;;  %v728_v27 = vld [vmem:[%s3029_s9 + $0x50] sm:$0xff]  ;;  %v755_v41 = vld [vmem:[%s3029_s9 + $0x128] sm:$0xff]  ;;  %v725_v30 = vld [vmem:[%s3029_s9 + $0x38] sm:$0xff] }
 0x1c7   :  { %v1567_v29 = vpop.f32.mrf.mxu0 }
 0x1c8   :  { %v451_v39 = vadd.f32 %v1566_v35, %v1455_v38  ;;  %v549_v53 = vmax.f32 %v531_v45, 0.0  ;;  %v758_v35 = vld [vmem:[%s3029_s9 + $0x140] sm:$0xff]  ;;  %v739_v45 = vld [vmem:[%s3029_s9 + $0xa8] sm:$0xff] }
 0x1c9   :  { %v1568_v32 = vpop.f32.mrf.mxu0 }
 0x1ca   :  { %v1569_v42 = vadd.f32 %v1568_v32, %v1567_v29  ;;  %v536_v31 = vadd.f32 %v1847_v28, %v451_v39  ;;  %v760_v32 = vld [vmem:[%s3029_s9 + $0x150] sm:$0xff]  ;;  %v727_v28 = vld [vmem:[%s3029_s9 + $0x48] sm:$0xff]  ;;  %v742_v39 = vld [vmem:[%s3029_s9 + $0xc0] sm:$0xff] }
 0x1cb   :  { %v1570_v33 = vpop.f32.mrf.mxu0 }
 0x1cc   :  { %v456_v46 = vadd.f32 %v1569_v42, %v1455_v38  ;;  %v550_v49 = vmax.f32 %v536_v31, 0.0  ;;  %v741_v42 = vld [vmem:[%s3029_s9 + $0xb8] sm:$0xff]  ;;  %v754_v31 = vld [vmem:[%s3029_s9 + $0x120] sm:$0xff] }
 0x1cd   :  { %v1571_v36 = vpop.f32.mrf.mxu0 }
 0x1ce   :  { %v1572_v40 = vadd.f32 %v1571_v36, %v1570_v33  ;;  %v541_v54 = vadd.f32 %v540_v51, %v456_v46  ;;  %v759_v33 = vld [vmem:[%s3029_s9 + $0x148] sm:$0xff]  ;;  %v757_v36 = vld [vmem:[%s3029_s9 + $0x138] sm:$0xff] }
 0x1cf   :  { %v723_v46 = vld [vmem:[%s3029_s9 + $0x28] sm:$0xff]  ;;  %v737_v51 = vld [vmem:[%s3029_s9 + $0x98] sm:$0xff] }
 0x1d0   :  { %v461_v34 = vadd.f32 %v1572_v40, %v1455_v38  ;;  %v551_v63 = vmax.f32 %v541_v54, 0.0  ;;  %v756_v38 = vld [vmem:[%s3029_s9 + $0x130] sm:$0xff]  ;;  %v726_v40 = vld [vmem:[%s3029_s9 + $0x40] sm:$0xff] }
 0x1d1   :  { %v736_v54 = vld [vmem:[%s3029_s9 + $0x90] sm:$0xff] }
 0x1d2   :  { %v546_v48 = vadd.f32 %v1850_v43, %v461_v34  ;;  %v740_v34 = vld [vmem:[%s3029_s9 + $0xb0] sm:$0xff] }
 0x1d3   :  { %v724_v43 = vld [vmem:[%s3029_s9 + $0x30] sm:$0xff] }
 0x1d4   :  { %v552_v58 = vmax.f32 %v546_v48, 0.0  ;;  %v738_v48 = vld [vmem:[%s3029_s9 + $0xa0] sm:$0xff] }
 0x1df   :  { %v1885_v47 = vpop.f32.mrf.mxu0 }
 0x1e0   :  { %v648_v50 = vadd.f32 %v1885_v47, %v1456_v44  ;;  %v752_v47 = vld [vmem:[%s3029_s9 + $0x110] sm:$0xff] }
 0x1e1   :  { %v642_v52 = vpop.f32.mrf.mxu0 }
 0x1e2   :  { %v662_v55 = vadd.f32 %v648_v50, %v550_v49  ;;  %v643_v56 = vadd.f32 %v1456_v44, %v642_v52  ;;  %v722_v49 = vld [vmem:[%s3029_s9 + $0x20] sm:$0xff]  ;;  %v751_v50 = vld [vmem:[%s3029_s9 + $0x108] sm:$0xff]  ;;  %v721_v52 = vld [vmem:[%s3029_s9 + $0x18] sm:$0xff] }
 0x1e3   :  { %v1888_v57 = vpop.f32.mrf.mxu0 }
 0x1e4   :  { %v2693_v59 = vmax.f32 %v662_v55, 0.0  ;;  %v661_v60 = vadd.f32 %v643_v56, %v549_v53  ;;  %v658_v61 = vadd.f32 %v1888_v57, %v1456_v44  ;;  %v750_v53 = vld [vmem:[%s3029_s9 + $0x100] sm:$0xff]  ;;  %v720_v55 = vld [vmem:[%s3029_s9 + $0x10] sm:$0xff]  ;;  %v735_v56 = vld [vmem:[%s3029_s9 + $0x88] sm:$0xff] }
 0x1e5   :  { %v652_v62 = vpop.f32.mrf.mxu0  ;;  %v2838_v57 = vld [vmem:[#allocation2] sm:$0xff] }
 0x1e6   :  { %768 = vst [vmem:[#allocation2 + $0x10] sm:$0xff] %v2693_v59  ;;  %v2696_v0 = vmax.f32 %v661_v60, 0.0  ;;  %v664_v1 = vadd.f32 %v658_v61, %v552_v58  ;;  %v653_v2 = vadd.f32 %v1456_v44, %v652_v62  ;;  %v753_v44 = vld [vmem:[%s3029_s9 + $0x118] sm:$0xff]  ;;  %v719_v58 = vld [vmem:[%s3029_s9 + $0x8] sm:$0xff]  ;;  %v734_v60 = vld [vmem:[%s3029_s9 + $0x80] sm:$0xff] }
 0x1e7   :  { %v718_v61 = vld [vmem:[%s3029_s9] sm:$0xff] }
 0x1e8   :  { %767 = vst [vmem:[#allocation2 + $0x8] sm:$0xff] %v2696_v0  ;;  %v2699_v3 = vmax.f32 %v664_v1, 0.0  ;;  %v663_v4 = vadd.f32 %v653_v2, %v551_v63  ;;  %1921 = vmatprep.mubr.f32.mxu0 %v2696_v0  ;;  %v1457_v2 = vld [vmem:[%s3028_s8] ss:$0 sm:$0xff] }
 0x1e9   :  { %1922 = vmatmul.mubr.f32.vlgmr.msra.gmra.mxu0 %v2693_v59 }
 0x1ea   :  { %770 = vst [vmem:[#allocation2 + $0x28] sm:$0xff] %v2699_v3  ;;  %v2707_v6 = vmax.f32 %v663_v4, 0.0  ;;  %1928 = vmatpush3.msra.mxu0 %v765_v23  ;;  %v729_v23 = vld [vmem:[%s3029_s9 + $0x58] sm:$0xff] }
 0x1eb   :  { %1929 = vmatprep.subr.mxu0 %v764_v5 }
 0x1ec   :  { %769 = vst [vmem:[#allocation2 + $0x20] sm:$0xff] %v2707_v6  ;;  %1924 = vmatprep.mubr.f32.mxu0 %v2707_v6  ;;  %1930 = vmatpush3.msra.mxu0 %v764_v5 }
 0x1ed   :  { %1925 = vmatmul.mubr.f32.gmra.mxu0 %v2699_v3  ;;  %1931 = vmatprep.subr.mxu0 %v763_v7 }
 0x1ee   :  { %1932 = vmatpush3.msra.mxu0 %v763_v7 }
 0x1ef   :  { %v775_v10 = vld [vmem:[#allocation2 + $0x6] sm:$0xff]  ;;  %1933 = vmatprep.subr.mxu0 %v762_v8  ;;  %v776_v14 = vld [vmem:[#allocation2 + $0xe] sm:$0xff] }
 0x1f0   :  { %v771_v11 = vld [vmem:[#allocation2 + $0x4] sm:$0xff]  ;;  %853 = vmatprep.mubr.f32.mxu1 %v775_v10  ;;  %1934 = vmatpush3.msra.mxu0 %v762_v8  ;;  %v772_v18 = vld [vmem:[#allocation2 + $0xc] sm:$0xff] }
 0x1f1   :  { %854 = vmatmul.mubr.f32.vlgmr.msra.gmra.mxu1 %v771_v11  ;;  %1935 = vmatprep.subr.mxu0 %v761_v9 }
 0x1f2   :  { %858 = vmatprep.mubr.f32.mxu1 %v776_v14  ;;  %1678 = vmatpush3.msra.mxu1 %v733_v12 }
 0x1f3   :  { %1679 = vmatprep.subr.mxu1 %v748_v13  ;;  %1936 = vmatpush3.msra.mxu0 %v761_v9  ;;  %v777_v20 = vld [vmem:[#allocation2 + $0x1e] sm:$0xff]  ;;  %v778_v26 = vld [vmem:[#allocation2 + $0x26] sm:$0xff] }
 0x1f4   :  { %1680 = vmatpush3.msra.mxu1 %v732_v15  ;;  %v773_v24 = vld [vmem:[#allocation2 + $0x1c] sm:$0xff]  ;;  %v774_v29 = vld [vmem:[#allocation2 + $0x24] sm:$0xff]  ;;  %1937 = vmatprep.subr.mxu0 %v760_v32 }
 0x1f5   :  { %859 = vmatmul.mubr.f32.gmra.mxu1 %v772_v18  ;;  %1681 = vmatprep.subr.mxu1 %v747_v16 }
 0x1f6   :  { %863 = vmatprep.mubr.f32.mxu1 %v777_v20  ;;  %1682 = vmatpush3.msra.mxu1 %v731_v17 }
 0x1f7   :  { %1683 = vmatprep.subr.mxu1 %v746_v19  ;;  %1938 = vmatpush3.msra.mxu0 %v760_v32 }
 0x1f8   :  { %1684 = vmatpush3.msra.mxu1 %v730_v21  ;;  %1939 = vmatprep.subr.mxu0 %v759_v33 }
 0x1f9   :  { %864 = vmatmul.mubr.f32.gmra.mxu1 %v773_v24  ;;  %1685 = vmatprep.subr.mxu1 %v745_v22 }
 0x1fa   :  { %868 = vmatprep.mubr.f32.mxu1 %v778_v26  ;;  %1686 = vmatpush3.msra.mxu1 %v729_v23 }
 0x1fb   :  { %1687 = vmatprep.subr.mxu1 %v744_v25  ;;  %1940 = vmatpush3.msra.mxu0 %v759_v33 }
 0x1fc   :  { %1688 = vmatpush3.msra.mxu1 %v728_v27  ;;  %1941 = vmatprep.subr.mxu0 %v758_v35 }
 0x1fd   :  { %869 = vmatmul.mubr.f32.gmra.mxu1 %v774_v29  ;;  %1942 = vmatpush3.msra.mxu0 %v758_v35 }
 0x1fe   :  { %1943 = vmatprep.subr.mxu0 %v757_v36  ;;  %1689 = vmatprep.subr.mxu1 %v743_v37 }
 0x1ff   :  { %1944 = vmatpush3.msra.mxu0 %v757_v36  ;;  %1690 = vmatpush3.msra.mxu1 %v727_v28 }
 0x200   :  { %1945 = vmatprep.subr.mxu0 %v756_v38  ;;  %1691 = vmatprep.subr.mxu1 %v742_v39 }
 0x201   :  { %1946 = vmatpush3.msra.mxu0 %v756_v38  ;;  %1692 = vmatpush3.msra.mxu1 %v726_v40 }
 0x202   :  { %1947 = vmatprep.subr.mxu0 %v755_v41  ;;  %1693 = vmatprep.subr.mxu1 %v741_v42  ;;  %v1195_v42 = vld [vmem:[%s3031_s11 + $0x70] sm:$0xff] }
 0x203   :  { %1948 = vmatpush3.msra.mxu0 %v755_v41  ;;  %1694 = vmatpush3.msra.mxu1 %v725_v30  ;;  %v1196_v41 = vld [vmem:[%s3031_s11 + $0x78] sm:$0xff]  ;;  %v1194_v30 = vld [vmem:[%s3031_s11 + $0x68] sm:$0xff] }
 0x204   :  { %1949 = vmatprep.subr.mxu0 %v754_v31  ;;  %1695 = vmatprep.subr.mxu1 %v740_v34  ;;  %v1192_v34 = vld [vmem:[%s3031_s11 + $0x58] sm:$0xff] }
 0x205   :  { %1950 = vmatpush3.msra.mxu0 %v754_v31  ;;  %1696 = vmatpush3.msra.mxu1 %v724_v43  ;;  %v1193_v31 = vld [vmem:[%s3031_s11 + $0x60] sm:$0xff]  ;;  %v1191_v43 = vld [vmem:[%s3031_s11 + $0x50] sm:$0xff] }
 0x206   :  { %1951 = vmatprep.subr.mxu0 %v753_v44  ;;  %1697 = vmatprep.subr.mxu1 %v739_v45  ;;  %v1189_v45 = vld [vmem:[%s3031_s11 + $0x40] sm:$0xff] }
 0x207   :  { %1952 = vmatpush3.msra.mxu0 %v753_v44  ;;  %1698 = vmatpush3.msra.mxu1 %v723_v46  ;;  %v1190_v44 = vld [vmem:[%s3031_s11 + $0x48] sm:$0xff]  ;;  %v1188_v46 = vld [vmem:[%s3031_s11 + $0x38] sm:$0xff] }
 0x208   :  { %1953 = vmatprep.subr.mxu0 %v752_v47  ;;  %1699 = vmatprep.subr.mxu1 %v738_v48  ;;  %v1186_v48 = vld [vmem:[%s3031_s11 + $0x28] sm:$0xff] }
 0x209   :  { %1954 = vmatpush3.msra.mxu0 %v752_v47  ;;  %1700 = vmatpush3.msra.mxu1 %v722_v49  ;;  %v1187_v47 = vld [vmem:[%s3031_s11 + $0x30] sm:$0xff]  ;;  %v1185_v49 = vld [vmem:[%s3031_s11 + $0x20] sm:$0xff] }
 0x20a   :  { %1955 = vmatprep.subr.mxu0 %v751_v50  ;;  %1701 = vmatprep.subr.mxu1 %v737_v51  ;;  %v1183_v51 = vld [vmem:[%s3031_s11 + $0x10] sm:$0xff] }
 0x20b   :  { %1956 = vmatpush3.msra.mxu0 %v751_v50  ;;  %1702 = vmatpush3.msra.mxu1 %v721_v52  ;;  %v1184_v50 = vld [vmem:[%s3031_s11 + $0x18] sm:$0xff]  ;;  %v1182_v52 = vld [vmem:[%s3031_s11 + $0x8] sm:$0xff] }
 0x20c   :  { %1957 = vmatprep.subr.mxu0 %v750_v53  ;;  %1703 = vmatprep.subr.mxu1 %v736_v54 }
 0x20d   :  { %1958 = vmatpush3.msra.mxu0 %v750_v53  ;;  %1704 = vmatpush3.msra.mxu1 %v720_v55  ;;  %v1181_v53 = vld [vmem:[%s3031_s11] sm:$0xff] }
 0x20e   :  { %2000 = vmatprep.subr.mxu0 %v2838_v57  ;;  %1705 = vmatprep.subr.mxu1 %v735_v56 }
 0x20f   :  { %1706 = vmatpush3.msra.mxu1 %v719_v58  ;;  %v1458_v58 = vld [vmem:[%s3030_s10] ss:$0 sm:$0xff] }
 0x210   :  { %1707 = vmatprep.subr.mxu1 %v734_v60 }
 0x211   :  { %1708 = vmatpush3.msra.mxu1 %v718_v61 }
 0x212   :  { %1965 = vmatprep.subr.mxu1 %v2838_v57 }
 0x2a9   :  { %v1923_v63 = vpop.f32.mrf.mxu0 }
 0x2ab   :  { %v940_v8 = vpop.f32.mrf.mxu0 }
 0x2ad   :  { %v1926_v15 = vpop.f32.mrf.mxu0 }
 0x2af   :  { %v950_v22 = vpop.f32.mrf.mxu0 }
 0x2b1   :  { %v1645_v62 = vpop.f32.mrf.mxu1 }
 0x2b3   :  { %v1646_v1 = vpop.f32.mrf.mxu1 }
 0x2b4   :  { %v1647_v4 = vadd.f32 %v1646_v1, %v1645_v62 }
 0x2b5   :  { %v1648_v5 = vpop.f32.mrf.mxu1 }
 0x2b6   :  { %v856_v7 = vadd.f32 %v1647_v4, %v1457_v2 }
 0x2b7   :  { %v1649_v9 = vpop.f32.mrf.mxu1 }
 0x2b8   :  { %v941_v10 = vadd.f32 %v940_v8, %v856_v7  ;;  %v1650_v11 = vadd.f32 %v1649_v9, %v1648_v5 }
 0x2b9   :  { %v1651_v12 = vpop.f32.mrf.mxu1 }
 0x2ba   :  { %v959_v13 = vmax.f32 %v941_v10, 0.0  ;;  %v861_v14 = vadd.f32 %v1650_v11, %v1457_v2 }
 0x2bb   :  { %v1652_v16 = vpop.f32.mrf.mxu1 }
 0x2bc   :  { %963 = vst [vmem:[#allocation2 + $0x8] sm:$0xff] %v959_v13  ;;  %v946_v17 = vadd.f32 %v1923_v63, %v861_v14  ;;  %v1653_v18 = vadd.f32 %v1652_v16, %v1651_v12  ;;  %1959 = vmatprep.mubr.f32.mxu0 %v959_v13 }
 0x2bd   :  { %v1654_v19 = vpop.f32.mrf.mxu1 }
 0x2be   :  { %v960_v20 = vmax.f32 %v946_v17, 0.0  ;;  %v866_v21 = vadd.f32 %v1653_v18, %v1457_v2 }
 0x2bf   :  { %v1655_v23 = vpop.f32.mrf.mxu1 }
 0x2c0   :  { %964 = vst [vmem:[#allocation2 + $0x10] sm:$0xff] %v960_v20  ;;  %v951_v24 = vadd.f32 %v950_v22, %v866_v21  ;;  %v1656_v25 = vadd.f32 %v1655_v23, %v1654_v19  ;;  %1960 = vmatmul.mubr.f32.vlgmr.msra.gmra.mxu0 %v960_v20 }
 0x2c2   :  { %v961_v26 = vmax.f32 %v951_v24, 0.0  ;;  %v871_v27 = vadd.f32 %v1656_v25, %v1457_v2 }
 0x2c3   :  { %v971_v29 = vld [vmem:[#allocation2 + $0x6] sm:$0xff] }
 0x2c4   :  { %v967_v32 = vld [vmem:[#allocation2 + $0x4] sm:$0xff]  ;;  %965 = vst [vmem:[#allocation2 + $0x20] sm:$0xff] %v961_v26  ;;  %v956_v33 = vadd.f32 %v1926_v15, %v871_v27  ;;  %1049 = vmatprep.mubr.f32.mxu1 %v971_v29  ;;  %1962 = vmatprep.mubr.f32.mxu0 %v961_v26 }
 0x2c5   :  { %1050 = vmatmul.mubr.f32.vlgmr.msra.gmra.mxu1 %v967_v32 }
 0x2c6   :  { %v962_v35 = vmax.f32 %v956_v33, 0.0  ;;  %1966 = vmatpush3.msra.mxu1 %v1196_v41 }
 0x2c7   :  { %v972_v36 = vld [vmem:[#allocation2 + $0xe] sm:$0xff]  ;;  %1967 = vmatprep.subr.mxu1 %v2838_v57 }
 0x2c8   :  { %v968_v37 = vld [vmem:[#allocation2 + $0xc] sm:$0xff]  ;;  %966 = vst [vmem:[#allocation2 + $0x28] sm:$0xff] %v962_v35  ;;  %1054 = vmatprep.mubr.f32.mxu1 %v972_v36  ;;  %1963 = vmatmul.mubr.f32.gmra.mxu0 %v962_v35 }
 0x2c9   :  { %1055 = vmatmul.mubr.f32.gmra.mxu1 %v968_v37  ;;  %2032 = vmatprep.mubr.msk.f32.mxu0 %vm2074_vm0, %v2838_v57 }
 0x2ca   :  { %1968 = vmatpush3.msra.mxu1 %v1195_v42 }
 0x2cb   :  { %v973_v28 = vld [vmem:[#allocation2 + $0x1e] sm:$0xff]  ;;  %1969 = vmatprep.subr.mxu1 %v2838_v57 }
 0x2cc   :  { %v969_v38 = vld [vmem:[#allocation2 + $0x1c] sm:$0xff]  ;;  %1059 = vmatprep.mubr.f32.mxu1 %v973_v28  ;;  %1970 = vmatpush3.msra.mxu1 %v1194_v30 }
 0x2cd   :  { %1060 = vmatmul.mubr.f32.gmra.mxu1 %v969_v38  ;;  %1971 = vmatprep.subr.mxu1 %v2838_v57 }
 0x2ce   :  { %1972 = vmatpush3.msra.mxu1 %v1193_v31 }
 0x2cf   :  { %v974_v39 = vld [vmem:[#allocation2 + $0x26] sm:$0xff]  ;;  %1973 = vmatprep.subr.mxu1 %v2838_v57 }
 0x2d0   :  { %v970_v40 = vld [vmem:[#allocation2 + $0x24] sm:$0xff]  ;;  %1064 = vmatprep.mubr.f32.mxu1 %v974_v39  ;;  %1974 = vmatpush3.msra.mxu1 %v1192_v34 }
 0x2d1   :  { %1065 = vmatmul.mubr.f32.gmra.mxu1 %v970_v40  ;;  %1975 = vmatprep.subr.mxu1 %v2838_v57 }
 0x2d2   :  { %1976 = vmatpush3.msra.mxu1 %v1191_v43  ;;  %1997 = vmatprep.mubr.msk.f32.mxu1 %vm2074_vm0, %v2838_v57 }
 0x2d3   :  { %1977 = vmatprep.subr.mxu1 %v2838_v57 }
 0x2d4   :  { %1978 = vmatpush3.msra.mxu1 %v1190_v44 }
 0x2d5   :  { %1979 = vmatprep.subr.mxu1 %v2838_v57 }
 0x2d6   :  { %1980 = vmatpush3.msra.mxu1 %v1189_v45 }
 0x2d7   :  { %1981 = vmatprep.subr.mxu1 %v2838_v57 }
 0x2d8   :  { %1982 = vmatpush3.msra.mxu1 %v1188_v46 }
 0x2d9   :  { %1983 = vmatprep.subr.mxu1 %v2838_v57 }
 0x2da   :  { %1984 = vmatpush3.msra.mxu1 %v1187_v47 }
 0x2db   :  { %1985 = vmatprep.subr.mxu1 %v2838_v57 }
 0x2dc   :  { %1986 = vmatpush3.msra.mxu1 %v1186_v48 }
 0x2dd   :  { %1987 = vmatprep.subr.mxu1 %v2838_v57 }
 0x2de   :  { %1988 = vmatpush3.msra.mxu1 %v1185_v49 }
 0x2df   :  { %1989 = vmatprep.subr.mxu1 %v2838_v57 }
 0x2e0   :  { %1990 = vmatpush3.msra.mxu1 %v1184_v50 }
 0x2e1   :  { %1991 = vmatprep.subr.mxu1 %v2838_v57 }
 0x2e2   :  { %1992 = vmatpush3.msra.mxu1 %v1183_v51 }
 0x2e3   :  { %1993 = vmatprep.subr.mxu1 %v2838_v57 }
 0x2e4   :  { %1994 = vmatpush3.msra.mxu1 %v1182_v52 }
 0x2e5   :  { %1995 = vmatprep.subr.mxu1 %v2838_v57 }
 0x2e6   :  { %1996 = vmatpush3.msra.mxu1 %v1181_v53 }
 0x380   :  { %v1961_v56 = vpop.f32.mrf.mxu0 }
 0x382   :  { %v1136_v63 = vpop.f32.mrf.mxu0 }
 0x385   :  { %v1709_v54 = vpop.f32.mrf.mxu1 }
 0x387   :  { %v1710_v55 = vpop.f32.mrf.mxu1 }
 0x388   :  { %v1711_v60 = vadd.f32 %v1710_v55, %v1709_v54  ;;  %v1964_v10 = vpop.f32.mrf.mxu0 }
 0x389   :  { %v1712_v61 = vpop.f32.mrf.mxu1 }
 0x38a   :  { %v1052_v62 = vadd.f32 %v1711_v60, %v1458_v58  ;;  %v1146_v17 = vpop.f32.mrf.mxu0  ;;  %v1215_v60 = vld [vmem:[%s3035_s15 + $0x78] sm:$0xff] }
 0x38b   :  { %v1713_v1 = vpop.f32.mrf.mxu1  ;;  %2001 = vmatpush3.msra.mxu0 %v1215_v60 }
 0x38c   :  { %v1137_v2 = vadd.f32 %v1136_v63, %v1052_v62  ;;  %v1714_v4 = vadd.f32 %v1713_v1, %v1712_v61  ;;  %v1214_v61 = vld [vmem:[%s3035_s15 + $0x70] sm:$0xff]  ;;  %2002 = vmatprep.subr.mxu0 %v2838_v57  ;;  %v1213_v62 = vld [vmem:[%s3035_s15 + $0x68] sm:$0xff]  ;;  %v1212_v63 = vld [vmem:[%s3035_s15 + $0x60] sm:$0xff] }
 0x38d   :  { %v1715_v5 = vpop.f32.mrf.mxu1  ;;  %2003 = vmatpush3.msra.mxu0 %v1214_v61  ;;  %v1211_v1 = vld [vmem:[%s3035_s15 + $0x58] sm:$0xff] }
 0x38e   :  { %v1155_v7 = vmax.f32 %v1137_v2, 0.0  ;;  %v1057_v8 = vadd.f32 %v1714_v4, %v1458_v58  ;;  %2004 = vmatprep.subr.mxu0 %v2838_v57  ;;  %v1210_v2 = vld [vmem:[%s3035_s15 + $0x50] sm:$0xff]  ;;  %v1209_v4 = vld [vmem:[%s3035_s15 + $0x48] sm:$0xff] }
 0x38f   :  { %v1716_v9 = vpop.f32.mrf.mxu1  ;;  %2005 = vmatpush3.msra.mxu0 %v1213_v62 }
 0x390   :  { %v1142_v11 = vadd.f32 %v1961_v56, %v1057_v8  ;;  %v1717_v12 = vadd.f32 %v1716_v9, %v1715_v5  ;;  %v1159_v14 = vadd.f32 %v1155_v7, %v2696_v0  ;;  %2006 = vmatprep.subr.mxu0 %v2838_v57  ;;  %v1208_v5 = vld [vmem:[%s3035_s15 + $0x40] sm:$0xff]  ;;  %v1207_v7 = vld [vmem:[%s3035_s15 + $0x38] sm:$0xff]  ;;  %v1206_v8 = vld [vmem:[%s3035_s15 + $0x30] sm:$0xff] }
 0x391   :  { %v1718_v13 = vpop.f32.mrf.mxu1  ;;  %2007 = vmatpush3.msra.mxu0 %v1212_v63  ;;  %v1205_v9 = vld [vmem:[%s3035_s15 + $0x28] sm:$0xff] }
 0x392   :  { %v1156_v15 = vmax.f32 %v1142_v11, 0.0  ;;  %v1062_v16 = vadd.f32 %v1717_v12, %v1458_v58  ;;  %v1163_v22 = vmax.f32 %v1159_v14, 0.0  ;;  %2008 = vmatprep.subr.mxu0 %v2838_v57  ;;  %v1203_v11 = vld [vmem:[%s3035_s15 + $0x18] sm:$0xff]  ;;  %v1202_v12 = vld [vmem:[%s3035_s15 + $0x10] sm:$0xff]  ;;  %v1200_v14 = vld [vmem:[%s3035_s15] sm:$0xff] }
 0x393   :  { %v1719_v18 = vpop.f32.mrf.mxu1  ;;  %2009 = vmatpush3.msra.mxu0 %v1211_v1 }
 0x394   :  { %v1160_v19 = vadd.f32 %v1156_v15, %v2693_v59  ;;  %v1147_v20 = vadd.f32 %v1146_v17, %v1062_v16  ;;  %v1720_v21 = vadd.f32 %v1719_v18, %v1718_v13  ;;  %2010 = vmatprep.subr.mxu0 %v2838_v57  ;;  %v1201_v13 = vld [vmem:[%s3035_s15 + $0x8] sm:$0xff] }
 0x395   :  { %2011 = vmatpush3.msra.mxu0 %v1210_v2 }
 0x396   :  { %v1164_v23 = vmax.f32 %v1160_v19, 0.0  ;;  %v1157_v24 = vmax.f32 %v1147_v20, 0.0  ;;  %v1067_v25 = vadd.f32 %v1720_v21, %v1458_v58  ;;  %2012 = vmatprep.subr.mxu0 %v2838_v57  ;;  %v1461_v19 = vld [vmem:[%s3033_s13] ss:$0 sm:$0xff]  ;;  %s2075_s13 = smov [#allocation3]  }
 0x397   :  { %2013 = vmatpush3.msra.mxu0 %v1209_v4  ;;  %v1462_v21 = vld [vmem:[%s3034_s14] ss:$0 sm:$0xff]  ;;  %s1446_s14 = sshll.u32 %s2075_s13, 4  ;;  %s1447_s14 = int_to_ptr.vmem [resolvable:$true] %s1446_s14 }
 0x398   :  { %v1167_v26 = vmax.f32 %v1163_v22, %v1164_v23  ;;  %v1152_v27 = vadd.f32 %v1964_v10, %v1067_v25  ;;  %v1161_v32 = vadd.f32 %v1157_v24, %v2707_v6  ;;  %v1298_v6 = vlaneseq  ;;  %2014 = vmatprep.subr.mxu0 %v2838_v57  ;;  %v1204_v10 = vld [vmem:[%s3035_s15 + $0x20] sm:$0xff]  ;;  %p2056_p1 = scmp.lt.s32.totalorder %s1447_s14, %s1447_s14 }
 0x399   :  { %2015 = vmatpush3.msra.mxu0 %v1208_v5 }
 0x39a   :  { %v1168_v29 = vrot.slane %v1167_v26, 4  ;;  %v1158_v33 = vmax.f32 %v1152_v27, 0.0  ;;  %v1165_v36 = vmax.f32 %v1161_v32, 0.0  ;;  %v2926_v45 = vand.u32 127, %v1298_v6  ;;  %2016 = vmatprep.subr.mxu0 %v2838_v57 }
 0x39b   :  { %2017 = vmatpush3.msra.mxu0 %v1207_v7 }
 0x39c   :  { %v1169_v35 = vmax.f32 %v1167_v26, %v1168_v29  ;;  %v1162_v0 = vadd.f32 %v1158_v33, %v2699_v3  ;;  %vm1300_vm2 = vcmp.lt.s32.totalorder %v2926_v45, 16  ;;  %v1459_v3 = vld [vmem:[%s3032_s12] ss:$0 sm:$0xff]  ;;  %2018 = vmatprep.subr.mxu0 %v2838_v57  ;;  %vm1416_vm4 = vcmp.lt.s32.totalorder %v2926_v45, 8 }
 0x39d   :  { %v1460_v47 = vsel %vm1300_vm2, 1.0, %v2838_v57  ;;  %2019 = vmatpush3.msra.mxu0 %v1206_v8  ;;  %v1464_v29 = vld [vmem:[%s3036_s16] ss:$0 sm:$0xff]  ;;  %s2051_s16 = scalar_lea.vmem %s1447_s14, 32 }
 0x39e   :  { %v1166_v37 = vmax.f32 %v1162_v0, 0.0  ;;  %v1170_v28 = vrot.slane %v1169_v35, 2  ;;  %2020 = vmatprep.subr.mxu0 %v2838_v57  ;;  %p2052_p0 = scmp.ne.s32.totalorder %s1447_s14, %s2051_s16  ;;  %p2057_p2 = scmp.lt.s32.totalorder %s2051_s16, %s2051_s16 }
 0x39f   :  { %2021 = vmatpush3.msra.mxu0 %v1205_v9 }
 0x3a0   :  { %v1174_v38 = vmax.f32 %v1165_v36, %v1166_v37  ;;  %v1171_v40 = vmax.f32 %v1169_v35, %v1170_v28  ;;  %2022 = vmatprep.subr.mxu0 %v2838_v57  ;;  %p2058_p3 = por %p2057_p2, %p2056_p1 }
 0x3a1   :  { %2023 = vmatpush3.msra.mxu0 %v1204_v10 }
 0x3a2   :  { %v1175_v59 = vrot.slane %v1174_v38, 4  ;;  %v1172_v42 = vrot.slane %v1171_v40, 1  ;;  %2024 = vmatprep.subr.mxu0 %v2838_v57  ;;  %p2059_p4 = pnand %p2058_p3, %p2052_p0 }
 0x3a3   :  { %2025 = vmatpush3.msra.mxu0 %v1203_v11 }
 0x3a4   :  { %v1176_v39 = vmax.f32 %v1174_v38, %v1175_v59  ;;  %v1173_v34 = vmax.f32 %v1171_v40, %v1172_v42  ;;  %2026 = vmatprep.subr.mxu0 %v2838_v57 }
 0x3a5   :  { %2027 = vmatpush3.msra.mxu0 %v1202_v12 }
 0x3a6   :  { %v1177_v41 = vrot.slane %v1176_v39, 2  ;;  %2028 = vmatprep.subr.mxu0 %v2838_v57 }
 0x3a7   :  { %2029 = vmatpush3.msra.mxu0 %v1201_v13 }
 0x3a8   :  { %v1178_v30 = vmax.f32 %v1176_v39, %v1177_v41  ;;  %2030 = vmatprep.subr.mxu0 %v2838_v57 }
 0x3a9   :  { %2031 = vmatpush3.msra.mxu0 %v1200_v14 }
 0x3aa   :  { %v1179_v31 = vrot.slane %v1178_v30, 1 }
 0x3ac   :  { %v1180_v43 = vmax.f32 %v1178_v30, %v1179_v31 }
 0x3ae   :  { %v1226_v44 = vsel %vm1225_vm1, %v1180_v43, %v1173_v34 }
 0x3af   :  { %1998 = vmatmul.mubr.f32.vlgmr.msra.gmra.mxu1 %v1226_v44 }
 0x46f   :  { %v1294_v46 = vpop.f32.mrf.mxu1 }
 0x470   :  { %v1295_v48 = vadd.f32 %v1459_v3, %v1294_v46 }
 0x471   :  { %v1999_v49 = vpop.f32.mrf.mxu1 }
 0x472   :  { %v1303_v50 = vmul.f32 %v1460_v47, %v1295_v48 }
 0x474   :  { %v1305_v51 = vsel %vm1304_vm3, %v1303_v50, 0.0 }
 0x475   :  { %1306 = vadd.xlane.f32.xlu0 %v1305_v51 }
 0x4fe   :  { %v1307_v52 = vpop.xlane.xlu0 %1306 }
 0x4ff   :  { %v1308_v53 = vmul.f32 0.0625, %v1307_v52 }
 0x501   :  { %v1309_v54 = vsub.f32 %v1295_v48, %v1308_v53 }
 0x503   :  { %v1310_v55 = vmul.f32 %v1460_v47, %v1309_v54 }
 0x505   :  { %v1311_v56 = vmul.f32 %v1310_v55, %v1310_v55 }
 0x507   :  { %v1312_v58 = vsel %vm1304_vm3, %v1311_v56, 0.0 }
 0x508   :  { %1313 = vadd.xlane.f32.xlu0 %v1312_v58 }
 0x591   :  { %v1314_v15 = vpop.xlane.xlu0 %1313 }
 0x592   :  { %v1315_v16 = vmul.f32 0.0625, %v1314_v15 }
 0x594   :  { %v1316_v17 = vadd.f32 1e-05, %v1315_v16 }
 0x596   :  { %2038 = vrsqrt.f32 %v1316_v17 }
 0x5a3   :  { %v2039_v18 = vpop.eup %2038 }
 0x5a4   :  { %v1318_v20 = vmul.f32 %v2039_v18, %v1310_v55 }
 0x5a6   :  { %v1325_v22 = vmul.f32 %v1461_v19, %v1318_v20 }
 0x5a8   :  { %v1332_v23 = vadd.f32 %v1462_v21, %v1325_v22 }
 0x5aa   :  { %v1463_v24 = vmul.f32 -1.442695, %v1332_v23 }
 0x5ac   :  { %2040 = vpow2.f32 %v1463_v24 }
 0x5b9   :  { %v2041_v57 = vpop.eup %2040 }
 0x5ba   :  { %v1336_v25 = vadd.f32 1.0, %v2041_v57 }
 0x5bc   :  { %2042 = vrcp.f32 %v1336_v25 }
 0x5c9   :  { %v2043_v26 = vpop.eup %2042 }
 0x5ca   :  { %v1339_v27 = vmul.f32 %v2043_v26, %v1332_v23 }
 0x5cc   :  { %2033 = vmatmul.mubr.f32.vlgmr.msra.gmra.mxu0 %v1339_v27 }
 0x68c   :  { %v1412_v32 = vpop.f32.mrf.mxu0 }
 0x68d   :  { %v1413_v33 = vadd.f32 %v1464_v29, %v1412_v32 }
 0x68e   :  { %v2034_v35 = vpop.f32.mrf.mxu0 }
 0x68f   :  { %v1417_v0 = vsel %vm1416_vm4, %v1413_v33, -1e+30 }
 0x690   :  { %v1418_v36 = vsel %vm1304_vm3, %v1417_v0, -inf }
 0x691   :  { %1419 = vmax.xlane.f32.xlu1 %v1418_v36 }
 0x71a   :  { %v1420_v37 = vpop.xlane.xlu1 %1419 }
 0x71b   :  { %v1421_v28 = vsub.f32 %v1417_v0, %v1420_v37 }
 0x71d   :  { %v1422_v38 = vmul.f32 1.442695, %v1421_v28 }
 0x71f   :  { %2044 = vpow2.f32 %v1422_v38 }
 0x72c   :  { %v2045_v59 = vpop.eup %2044 }
 0x72d   :  { %v1424_v39 = vsel %vm1416_vm4, %v2045_v59, 0.0 }
 0x72e   :  { %v1425_v40 = vsel %vm1304_vm3, %v1424_v39, 0.0 }
 0x72f   :  { %1426 = vadd.xlane.f32.xlu1 %v1425_v40 }
 0x7b8   :  { %v1427_v41 = vpop.xlane.xlu1 %1426 }
 0x7b9   :  { %2046 = vrcp.f32 %v1427_v41 }
 0x7c6   :  { %v2047_v42 = vpop.eup %2046 }
 0x7c7   :  { %v1429_v30 = vmul.f32 %v2047_v42, %v1424_v39 }
 0x7c9   :  { %v1430_v31 = vmax.f32 %v1429_v30, 0.0 }
 0x7cb   :  { %v1431_v34 = vmin.f32 %v1430_v31, 0.1 }
 0x7cd   :  { %v1432_v43 = vsel %vm1416_vm4, %v1431_v34, 0.0 }
 0x7ce   :  { %v1433_v44 = vsel %vm1304_vm3, %v1432_v43, 0.0 }
 0x7cf   :  { %1434 = vadd.xlane.f32.xlu0 %v1433_v44 }
 0x858   :  { %v1435_v6 = vpop.xlane.xlu0 %1434 }
 0x859   :  { %v1436_v3 = vadd.f32 1e-08, %v1435_v6 }
 0x85b   :  { %2048 = vrcp.f32 %v1436_v3 }
 0x868   :  { %v2049_v46 = vpop.eup %2048 }
 0x869   :  { %v1438_v47 = vmul.f32 %v2049_v46, %v1432_v43 }
 0x86b   :  { %1439 = vst [vmem:[#allocation3] sm:$0x3] %v1438_v47 }
 0x86c   :  { %2062 = shalt.err (!%p2059_p4)
}
 0x86d   :  { %1449 = dma.vmem_to_hbm [thread:$0]  %s1447_s14, 32, %s3037_s17, [#allocation4]  }
 0x86e   :  { %2071 = dma.done.wait [#allocation4], 32  }
 0x86f   :  { %2072 = vsyncadd [#allocation4], 4294967264 }
 0x870   :  { %1453 = vsyncpa [#allocation4], 1 }

</bundles_post_ra>
